<compile_context>
chip_gen: v6e
topology: v6e:2x2x1
jax: 0.10.0
libtpu: 0.0.40
codegen_flags: <defaults>
</compile_context>

<pallas_src>
import functools

import jax
import jax.numpy as jnp
from jax.experimental import pallas as pl
from jax.experimental.pallas import tpu as pltpu


# ----------------------------- configuration -----------------------------
INPUT_DIM = 32           # small feature input
HIDDEN = 512             # module default hidden width
N_HIDDEN_LAYERS = 4      # hidden_dims=[512, 512, 512, 512]
OUTPUT_DIM = 1           # module default
N_MODELS = 3             # module default
BATCH = 8                # small batch (sublane-friendly)


# ------------------------------ Pallas kernel -----------------------------
def ensemble_mlp_kernel(x_ref, w0_ref, b0_ref, wh_ref, bh_ref, wo_ref, bo_ref,
                        out_ref, *, n_hidden_mm):
    """One grid step = forward pass of one ensemble member.

    x_ref  : (B, D_in)                 f32
    w0_ref : (1, D_in, H)              bf16    b0_ref : (1, 1, H)            f32
    wh_ref : (1, n_hidden_mm, H, H)    bf16    bh_ref : (1, n_hidden_mm, 1, H) f32
    wo_ref : (1, 1, H)  (transposed)   bf16    bo_ref : (1, 1, 1)            f32
    out_ref: (1, B, 1)  -- this model's own output block (no shared accumulator)
    """
    # Layer 0: (B, D_in) @ (D_in, H) + b  -> ReLU    (bf16 MXU, f32 accumulate)
    x = x_ref[...].astype(jnp.bfloat16)
    h = jnp.dot(x, w0_ref[0], preferred_element_type=jnp.float32)
    h = jnp.maximum(h + b0_ref[0], 0.0)

    # Hidden layers 1..3: (B, H) @ (H, H) + b -> ReLU   (static unroll)
    for l in range(n_hidden_mm):
        h = jnp.dot(h.astype(jnp.bfloat16), wh_ref[0, l],
                    preferred_element_type=jnp.float32)
        h = jnp.maximum(h + bh_ref[0, l], 0.0)

    # Output layer (H -> 1): VPU multiply + lane reduction (kept off the MXU).
    y = jnp.sum(h * wo_ref[0].astype(jnp.float32), axis=-1, keepdims=True)
    y = y + bo_ref[0]                               # (B, 1)

    out_ref[0] = y


def ensemble_forward(x, w0, b0, wh, bh, wo, bo):
    """x: (B, D_in) f32; weights bf16, biases f32 -> (B,) f32 ensemble mean."""
    B, D_in = x.shape
    n_models = w0.shape[0]
    n_hidden_mm = wh.shape[1]
    H = w0.shape[2]

    kernel = functools.partial(ensemble_mlp_kernel, n_hidden_mm=n_hidden_mm)

    per_model = pl.pallas_call(
        kernel,
        out_shape=jax.ShapeDtypeStruct((n_models, B, 1), jnp.float32),
        grid_spec=pltpu.PrefetchScalarGridSpec(
            num_scalar_prefetch=0,
            grid=(n_models,),
            in_specs=[
                pl.BlockSpec((B, D_in), lambda m: (0, 0)),                      # x
                pl.BlockSpec((1, D_in, H), lambda m: (m, 0, 0)),                # W0 (bf16)
                pl.BlockSpec((1, 1, H), lambda m: (m, 0, 0)),                   # b0
                pl.BlockSpec((1, n_hidden_mm, H, H), lambda m: (m, 0, 0, 0)),   # Wh (bf16)
                pl.BlockSpec((1, n_hidden_mm, 1, H), lambda m: (m, 0, 0, 0)),   # bh
                pl.BlockSpec((1, 1, H), lambda m: (m, 0, 0)),                   # Wo (bf16, transposed)
                pl.BlockSpec((1, 1, 1), lambda m: (m, 0, 0)),                   # bo
            ],
            # One distinct output block per model -> no cross-step dependency,
            # so the model axis can be sharded across TensorCores (v7x).
            out_specs=pl.BlockSpec((1, B, 1), lambda m: (m, 0, 0)),
        ),
        compiler_params=pltpu.CompilerParams(
            dimension_semantics=("parallel",),
        ),
    )(x, w0, b0, wh, bh, wo, bo)

    # Ensemble mean over models, done in the wrapper (cheap: (n_models, B)).
    return per_model[:, :, 0].mean(axis=0)          # (B,)


# ------------------------- deterministic parameters ------------------------
def init_params(key, n_models, d_in, hidden, n_hidden_layers):
    """PyTorch-style uniform(-1/sqrt(fan_in), 1/sqrt(fan_in)) init, stacked, f32."""
    ks = jax.random.split(key, 10)

    def u(k, shape, fan_in):
        bound = 1.0 / jnp.sqrt(fan_in)
        return jax.random.uniform(k, shape, jnp.float32, -bound, bound)

    w0 = u(ks[0], (n_models, d_in, hidden), d_in)
    b0 = u(ks[1], (n_models, 1, hidden), d_in)
    n_hidden_mm = n_hidden_layers - 1
    wh = u(ks[2], (n_models, n_hidden_mm, hidden, hidden), hidden)
    bh = u(ks[3], (n_models, n_hidden_mm, 1, hidden), hidden)
    # last layer weight stored transposed as a row vector (1, H) per model
    wo = u(ks[4], (n_models, 1, hidden), hidden)
    bo = u(ks[5], (n_models, 1, 1), hidden)
    return w0, b0, wh, bh, wo, bo


def reference_forward(x, w0, b0, wh, bh, wo, bo):
    """Plain-JAX f32 reference of the ensemble forward (original semantics)."""
    outs = []
    for m in range(w0.shape[0]):
        h = jnp.maximum(x @ w0[m] + b0[m], 0.0)
        for l in range(wh.shape[1]):
            h = jnp.maximum(h @ wh[m, l] + bh[m, l], 0.0)
        y = jnp.sum(h * wo[m], axis=-1, keepdims=True) + bo[m]   # (B, 1)
        outs.append(y)
    outputs = jnp.concatenate(outs, axis=1)   # (B, n_models)
    return outputs.mean(axis=1)               # (B,)


# ---------------------------------- main -----------------------------------
if __name__ == "__main__":
    key = jax.random.PRNGKey(0)
    kx, kp = jax.random.split(key)

    x = jax.random.normal(kx, (BATCH, INPUT_DIM), jnp.float32)
    w0, b0, wh, bh, wo, bo = init_params(kp, N_MODELS, INPUT_DIM, HIDDEN,
                                         N_HIDDEN_LAYERS)

    # bf16 copies of the weights for the kernel (halves HBM weight streaming,
    # MXU-native on v5e/v6e/v7x).  Biases remain f32.
    w0_bf = w0.astype(jnp.bfloat16)
    wh_bf = wh.astype(jnp.bfloat16)
    wo_bf = wo.astype(jnp.bfloat16)

    out = ensemble_forward(x, w0_bf, b0, wh_bf, bh, wo_bf, bo)
    out = jax.block_until_ready(out)

    ref = reference_forward(x, w0, b0, wh, bh, wo, bo)
    assert out.shape == (BATCH,)
    assert jnp.allclose(out, ref, rtol=1e-2, atol=1e-2), (out, ref)

    print("KERNEL_OK")
</pallas_src>

<mosaic_0001>
module attributes {stable_mosaic.version = 11 : i64} {
  func.func @ensemble_mlp_kernel(%arg0: i32, %arg1: memref<8x32xf32, #tpu.memory_space<vmem>>, %arg2: memref<1x32x512xbf16, #tpu.memory_space<vmem>>, %arg3: memref<1x1x512xf32, #tpu.memory_space<vmem>>, %arg4: memref<1x3x512x512xbf16, #tpu.memory_space<vmem>>, %arg5: memref<1x3x1x512xf32, #tpu.memory_space<vmem>>, %arg6: memref<1x1x512xbf16, #tpu.memory_space<vmem>>, %arg7: memref<1x1x1xf32, #tpu.memory_space<vmem>>, %arg8: memref<1x8x1xf32, #tpu.memory_space<vmem>>) attributes {dimension_semantics = [#tpu.dimension_semantics<parallel>], iteration_bounds = array<i64: 3>, scalar_prefetch = 0 : i64, scratch_operands = 0 : i64, tpu.core_type = #tpu.core_type<tc>, window_params = [{pipeline_mode = #tpu.pipeline_mode<synchronous>, transform_indices = @transform_0, window_bounds = array<i64: 8, 32>}, {transform_indices = @transform_1, window_bounds = array<i64: 1, 32, 512>}, {transform_indices = @transform_2, window_bounds = array<i64: 1, 1, 512>}, {transform_indices = @transform_3, window_bounds = array<i64: 1, 3, 512, 512>}, {transform_indices = @transform_4, window_bounds = array<i64: 1, 3, 1, 512>}, {transform_indices = @transform_5, window_bounds = array<i64: 1, 1, 512>}, {transform_indices = @transform_6, window_bounds = array<i64: 1, 1, 1>}, {transform_indices = @transform_7, window_bounds = array<i64: 1, 8, 1>}]} {
    %c0 = arith.constant 0 : index
    %c0_0 = arith.constant 0 : index
    %0 = vector.load %arg1[%c0, %c0_0] : memref<8x32xf32, #tpu.memory_space<vmem>>, vector<8x32xf32>
    %1 = arith.truncf %0 : vector<8x32xf32> to vector<8x32xbf16>
    %c0_1 = arith.constant 0 : index
    %c0_2 = arith.constant 0 : index
    %c0_3 = arith.constant 0 : index
    %2 = vector.load %arg2[%c0_1, %c0_2, %c0_3] : memref<1x32x512xbf16, #tpu.memory_space<vmem>>, vector<1x32x512xbf16>
    %3 = vector.shape_cast %2 : vector<1x32x512xbf16> to vector<32x512xbf16>
    %cst = arith.constant dense<0.000000e+00> : vector<8x512xf32>
    %4 = tpu.matmul %1, %3, %cst {dimension_numbers = #tpu.dot_dimension_numbers<[1], [0], [0], [1], [0, 0, 1, 1], [], []>} : vector<8x32xbf16>, vector<32x512xbf16>, vector<8x512xf32> -> vector<8x512xf32>
    %c0_4 = arith.constant 0 : index
    %c0_5 = arith.constant 0 : index
    %c0_6 = arith.constant 0 : index
    %5 = vector.load %arg3[%c0_4, %c0_5, %c0_6] : memref<1x1x512xf32, #tpu.memory_space<vmem>>, vector<1x1x512xf32>
    %6 = vector.shape_cast %5 : vector<1x1x512xf32> to vector<1x512xf32>
    %7 = vector.broadcast %6 : vector<1x512xf32> to vector<8x512xf32>
    %8 = arith.addf %4, %7 : vector<8x512xf32>
    %cst_7 = arith.constant 0.000000e+00 : f32
    %9 = vector.broadcast %cst_7 : f32 to vector<8x512xf32>
    %10 = arith.maximumf %8, %9 : vector<8x512xf32>
    %11 = arith.truncf %10 : vector<8x512xf32> to vector<8x512xbf16>
    %c0_8 = arith.constant 0 : index
    %c0_9 = arith.constant 0 : index
    %c0_10 = arith.constant 0 : index
    %c0_11 = arith.constant 0 : index
    %12 = vector.load %arg4[%c0_8, %c0_9, %c0_10, %c0_11] : memref<1x3x512x512xbf16, #tpu.memory_space<vmem>>, vector<1x1x512x512xbf16>
    %13 = vector.shape_cast %12 : vector<1x1x512x512xbf16> to vector<512x512xbf16>
    %cst_12 = arith.constant dense<0.000000e+00> : vector<8x512xf32>
    %14 = tpu.matmul %11, %13, %cst_12 {dimension_numbers = #tpu.dot_dimension_numbers<[1], [0], [0], [1], [0, 0, 1, 1], [], []>} : vector<8x512xbf16>, vector<512x512xbf16>, vector<8x512xf32> -> vector<8x512xf32>
    %c0_13 = arith.constant 0 : index
    %c0_14 = arith.constant 0 : index
    %c0_15 = arith.constant 0 : index
    %c0_16 = arith.constant 0 : index
    %15 = vector.load %arg5[%c0_13, %c0_14, %c0_15, %c0_16] : memref<1x3x1x512xf32, #tpu.memory_space<vmem>>, vector<1x1x1x512xf32>
    %16 = vector.shape_cast %15 : vector<1x1x1x512xf32> to vector<1x512xf32>
    %17 = vector.broadcast %16 : vector<1x512xf32> to vector<8x512xf32>
    %18 = arith.addf %14, %17 : vector<8x512xf32>
    %cst_17 = arith.constant 0.000000e+00 : f32
    %19 = vector.broadcast %cst_17 : f32 to vector<8x512xf32>
    %20 = arith.maximumf %18, %19 : vector<8x512xf32>
    %21 = arith.truncf %20 : vector<8x512xf32> to vector<8x512xbf16>
    %c0_18 = arith.constant 0 : index
    %c1 = arith.constant 1 : index
    %c0_19 = arith.constant 0 : index
    %c0_20 = arith.constant 0 : index
    %22 = vector.load %arg4[%c0_18, %c1, %c0_19, %c0_20] : memref<1x3x512x512xbf16, #tpu.memory_space<vmem>>, vector<1x1x512x512xbf16>
    %23 = vector.shape_cast %22 : vector<1x1x512x512xbf16> to vector<512x512xbf16>
    %cst_21 = arith.constant dense<0.000000e+00> : vector<8x512xf32>
    %24 = tpu.matmul %21, %23, %cst_21 {dimension_numbers = #tpu.dot_dimension_numbers<[1], [0], [0], [1], [0, 0, 1, 1], [], []>} : vector<8x512xbf16>, vector<512x512xbf16>, vector<8x512xf32> -> vector<8x512xf32>
    %c0_22 = arith.constant 0 : index
    %c1_23 = arith.constant 1 : index
    %c0_24 = arith.constant 0 : index
    %c0_25 = arith.constant 0 : index
    %25 = vector.load %arg5[%c0_22, %c1_23, %c0_24, %c0_25] : memref<1x3x1x512xf32, #tpu.memory_space<vmem>>, vector<1x1x1x512xf32>
    %26 = vector.shape_cast %25 : vector<1x1x1x512xf32> to vector<1x512xf32>
    %27 = vector.broadcast %26 : vector<1x512xf32> to vector<8x512xf32>
    %28 = arith.addf %24, %27 : vector<8x512xf32>
    %cst_26 = arith.constant 0.000000e+00 : f32
    %29 = vector.broadcast %cst_26 : f32 to vector<8x512xf32>
    %30 = arith.maximumf %28, %29 : vector<8x512xf32>
    %31 = arith.truncf %30 : vector<8x512xf32> to vector<8x512xbf16>
    %c0_27 = arith.constant 0 : index
    %c2 = arith.constant 2 : index
    %c0_28 = arith.constant 0 : index
    %c0_29 = arith.constant 0 : index
    %32 = vector.load %arg4[%c0_27, %c2, %c0_28, %c0_29] : memref<1x3x512x512xbf16, #tpu.memory_space<vmem>>, vector<1x1x512x512xbf16>
    %33 = vector.shape_cast %32 : vector<1x1x512x512xbf16> to vector<512x512xbf16>
    %cst_30 = arith.constant dense<0.000000e+00> : vector<8x512xf32>
    %34 = tpu.matmul %31, %33, %cst_30 {dimension_numbers = #tpu.dot_dimension_numbers<[1], [0], [0], [1], [0, 0, 1, 1], [], []>} : vector<8x512xbf16>, vector<512x512xbf16>, vector<8x512xf32> -> vector<8x512xf32>
    %c0_31 = arith.constant 0 : index
    %c2_32 = arith.constant 2 : index
    %c0_33 = arith.constant 0 : index
    %c0_34 = arith.constant 0 : index
    %35 = vector.load %arg5[%c0_31, %c2_32, %c0_33, %c0_34] : memref<1x3x1x512xf32, #tpu.memory_space<vmem>>, vector<1x1x1x512xf32>
    %36 = vector.shape_cast %35 : vector<1x1x1x512xf32> to vector<1x512xf32>
    %37 = vector.broadcast %36 : vector<1x512xf32> to vector<8x512xf32>
    %38 = arith.addf %34, %37 : vector<8x512xf32>
    %cst_35 = arith.constant 0.000000e+00 : f32
    %39 = vector.broadcast %cst_35 : f32 to vector<8x512xf32>
    %40 = arith.maximumf %38, %39 : vector<8x512xf32>
    %c0_36 = arith.constant 0 : index
    %c0_37 = arith.constant 0 : index
    %c0_38 = arith.constant 0 : index
    %41 = vector.load %arg6[%c0_36, %c0_37, %c0_38] : memref<1x1x512xbf16, #tpu.memory_space<vmem>>, vector<1x1x512xbf16>
    %42 = vector.shape_cast %41 : vector<1x1x512xbf16> to vector<1x512xbf16>
    %43 = arith.extf %42 : vector<1x512xbf16> to vector<1x512xf32>
    %44 = vector.broadcast %43 : vector<1x512xf32> to vector<8x512xf32>
    %45 = arith.mulf %40, %44 : vector<8x512xf32>
    %cst_39 = arith.constant dense<0.000000e+00> : vector<8xf32>
    %46 = vector.multi_reduction <add>, %45, %cst_39 [1] : vector<8x512xf32> to vector<8xf32>
    %47 = vector.shape_cast %46 : vector<8xf32> to vector<8x1xf32>
    %c0_40 = arith.constant 0 : index
    %c0_41 = arith.constant 0 : index
    %c0_42 = arith.constant 0 : index
    %48 = vector.load %arg7[%c0_40, %c0_41, %c0_42] : memref<1x1x1xf32, #tpu.memory_space<vmem>>, vector<1x1x1xf32>
    %49 = vector.shape_cast %48 : vector<1x1x1xf32> to vector<1x1xf32>
    %50 = vector.broadcast %49 : vector<1x1xf32> to vector<8x1xf32>
    %51 = arith.addf %47, %50 : vector<8x1xf32>
    %c0_43 = arith.constant 0 : index
    %c0_44 = arith.constant 0 : index
    %c0_45 = arith.constant 0 : index
    %52 = vector.load %arg8[%c0_43, %c0_44, %c0_45] : memref<1x8x1xf32, #tpu.memory_space<vmem>>, vector<1x8x1xf32>
    %53 = vector.shape_cast %52 : vector<1x8x1xf32> to vector<8x1xf32>
    %54 = vector.shape_cast %51 : vector<8x1xf32> to vector<1x8x1xf32>
    tpu.vector_store %arg8[%c0_43, %c0_44, %c0_45], %54 {strides = array<i32>} : memref<1x8x1xf32, #tpu.memory_space<vmem>>, vector<1x8x1xf32>,
    return
  }
  func.func @transform_0(%arg0: i32) -> (i32, i32) {
    %c0_i32 = arith.constant 0 : i32
    %c0_i32_0 = arith.constant 0 : i32
    %c0_i32_1 = arith.constant 0 : i32
    return %c0_i32, %c0_i32_0 : i32, i32
  }
  func.func @transform_1(%arg0: i32) -> (i32, i32, i32) {
    %c0_i32 = arith.constant 0 : i32
    %c0_i32_0 = arith.constant 0 : i32
    %c0_i32_1 = arith.constant 0 : i32
    return %arg0, %c0_i32, %c0_i32_0 : i32, i32, i32
  }
  func.func @transform_2(%arg0: i32) -> (i32, i32, i32) {
    %c0_i32 = arith.constant 0 : i32
    %c0_i32_0 = arith.constant 0 : i32
    %c0_i32_1 = arith.constant 0 : i32
    return %arg0, %c0_i32, %c0_i32_0 : i32, i32, i32
  }
  func.func @transform_3(%arg0: i32) -> (i32, i32, i32, i32) {
    %c0_i32 = arith.constant 0 : i32
    %c0_i32_0 = arith.constant 0 : i32
    %c0_i32_1 = arith.constant 0 : i32
    %c0_i32_2 = arith.constant 0 : i32
    return %arg0, %c0_i32, %c0_i32_0, %c0_i32_1 : i32, i32, i32, i32
  }
  func.func @transform_4(%arg0: i32) -> (i32, i32, i32, i32) {
    %c0_i32 = arith.constant 0 : i32
    %c0_i32_0 = arith.constant 0 : i32
    %c0_i32_1 = arith.constant 0 : i32
    %c0_i32_2 = arith.constant 0 : i32
    return %arg0, %c0_i32, %c0_i32_0, %c0_i32_1 : i32, i32, i32, i32
  }
  func.func @transform_5(%arg0: i32) -> (i32, i32, i32) {
    %c0_i32 = arith.constant 0 : i32
    %c0_i32_0 = arith.constant 0 : i32
    %c0_i32_1 = arith.constant 0 : i32
    return %arg0, %c0_i32, %c0_i32_0 : i32, i32, i32
  }
  func.func @transform_6(%arg0: i32) -> (i32, i32, i32) {
    %c0_i32 = arith.constant 0 : i32
    %c0_i32_0 = arith.constant 0 : i32
    %c0_i32_1 = arith.constant 0 : i32
    return %arg0, %c0_i32, %c0_i32_0 : i32, i32, i32
  }
  func.func @transform_7(%arg0: i32) -> (i32, i32, i32) {
    %c0_i32 = arith.constant 0 : i32
    %c0_i32_0 = arith.constant 0 : i32
    %c0_i32_1 = arith.constant 0 : i32
    return %arg0, %c0_i32, %c0_i32_0 : i32, i32, i32
  }
}

</mosaic_0001>

<bundles_post_ra>
// kernel: tpu_custom_call.1
= control target key start
LH: loop header
LB: loop body
LE: loop exit
PB: predicated region body
PF: predicated region fallthrough
CT: control target
= control target key end

     0   :  { %s6037_s0 = inlined_call_operand.hbm [shape: f32[8,32], index: 0, kind: input, shape index: {}]   ;;  %s6038_s1 = inlined_call_operand.hbm [shape: bf16[3,32,512], index: 1, kind: input, shape index: {}]   ;;  %s6039_s2 = inlined_call_operand.hbm [shape: f32[3,1,512], index: 2, kind: input, shape index: {}]   ;;  %s6040_s3 = inlined_call_operand.hbm [shape: bf16[3,3,512,512], index: 3, kind: input, shape index: {}]   ;;  %s6041_s4 = inlined_call_operand.hbm [shape: f32[3,3,1,512], index: 4, kind: input, shape index: {}]   ;;  %s6042_s5 = inlined_call_operand.vmem [shape: bf16[3,1,512], index: 5, kind: input, shape index: {}]   ;;  %s6043_s6 = inlined_call_operand.vmem [shape: f32[3,1,1], index: 6, kind: input, shape index: {}]   ;;  %s6044_s7 = inlined_call_operand.vmem [shape: f32[3,8,1], index: 7, kind: output, shape index: {}]  }
   0x1   :  { %6049 = sst [smem:[#allocation13_spill]] %s6038_s1 }
   0x2   :  { %6050 = sst [smem:[#allocation14_spill]] %s6040_s3 }
   0x3   :  { %12 = vsyncpa [#allocation3], 0 }
   0x4   :  { %13 = vsyncpa [#allocation5], 0 }
   0x5   :  { %15 = vsyncpa [#allocation5 + $0x1], 0 }
   0x6   :  { %16 = vsyncpa [#allocation8], 0 }
   0x7   :  { %18 = vsyncpa [#allocation8 + $0x1], 0  ;;  %s5296_s24 = smov 0   ;;  %s5298_s25 = smov 0  }
   0x8   :  { %s5300_s26 = smov 0   ;;  %s5302_s27 = smov 0  }
   0x9 LB: > { %s5317_s28 = sadd.s32 1, %s5244_s27   ;;  %s52_s29 = sadd.s32 1, %s5240_s26  ;;  %s5244_s27 = sphi %s5302_s27, %s6067_s27   ;;  %s5240_s26 = sphi %s5300_s26, %s6066_s26   ;;  %s5236_s25 = sphi %s5298_s25, %s6065_s25   ;;  %s5232_s24 = sphi %s5296_s24, %s6064_s24  }
   0xa   : > { %s49_s30 = ssub.s32 %s5244_s27, %s5317_s28  ;;  %p59_p0 = scmp.ne.s32.totalorder %s5240_s26, %s5236_s25 }
   0xb   : > { %p50_p1 = scmp.eq.s32.totalorder %s49_s30, 0  ;;  %p60_p2 = scmp.eq.s32.totalorder %s5244_s27, 0 }
   0xc   : > { %p4436_p3 = scmp.lt.s32.totalorder %s5244_s27, 3  ;;  %s256_s9 = sand.u32 1, %s5244_s27  }
   0xd   : > { %s5327_s8 = scalar_select %p50_p1, %s5240_s26, %s52_s29  }
   0xe   : > { %p61_p4 = por %p60_p2, %p59_p0  ;;  %s5331_s10 = sand.u32 1, %s5240_s26  }
   0xf   : > { %s3729_s11 = sshll.u32 %s5331_s10, 6  ;;  %s4398_s12 = sshll.u32 %s5244_s27, 10 }
  0x10   : > { %s6051_s1 = sld [smem:[#allocation13_spill]]  ;;  %s260_s16 = scalar_lea.vmem [#allocation4], %s3729_s11 }
  0x11   : > { %s267_s17 = sshll.u32 %s260_s16, 4  ;;  %p5340_p5 = pnand %p4436_p3, %p61_p4  ;;  %s5344_s17 = int_to_ptr.vmem [resolvable:$true] %s267_s17 }
  0x12   : > { %s5348_s19 = scalar_lea.sflag [#allocation5], %s256_s9 }
  0x13   : > { %p5354_p7 = pneg %p5340_p5 }
  0x16   : > { %s5338_s15 = scalar_lea.hbm %s6051_s1, %s4398_s12  ;;  %s5069_s29 = scalar_lea.hbm %s6051_s1, 3072 }
  0x17   : > { %s5064_s20 = scalar_lea.hbm %s5338_s15, 1024  ;;  %p5070_p10 = scmp.lt.s32.totalorder %s5338_s15, %s6051_s1 }
  0x18   : > { %p5065_p6 = scmp.ne.s32.totalorder %s5338_s15, %s5064_s20  ;;  %p5071_p11 = scmp.lt.s32.totalorder %s5069_s29, %s5064_s20 }
  0x1a   : > { %p5067_p8 = pnand %p5354_p7, %p5065_p6  ;;  %p5072_p12 = por %p5071_p11, %p5070_p10 }
  0x1c   : > { %p5068_p9 = pneg %p5067_p8 }
  0x1e   : > { %p5073_p13 = pnand %p5072_p12, %p5068_p9 }
  0x20   : > { %5076 = shalt.err (!%p5073_p13)
}
  0x21   : > { %s5077_s12 = scalar_lea.vmem %s5344_s17, 1024  ;;  %s5246_s13 = smov [#allocation4]  }
  0x22   : > { %p5078_p0 = scmp.ne.s32.totalorder %s5344_s17, %s5077_s12  ;;  %s5082_s14 = sshll.u32 %s5246_s13, 4  ;;  %s5083_s14 = int_to_ptr.vmem [resolvable:$false] %s5082_s14 }
  0x23   : > { %s5084_s16 = scalar_lea.vmem %s5083_s14, 2048  ;;  %p5085_p3 = scmp.lt.s32.totalorder %s5344_s17, %s5083_s14 }
  0x24   : > { %p5080_p1 = pnand %p5078_p0, %p5354_p7  ;;  %p5086_p4 = scmp.lt.s32.totalorder %s5084_s16, %s5077_s12 }
  0x26   : > { %p5081_p2 = pneg %p5080_p1  ;;  %p5087_p6 = por %p5086_p4, %p5085_p3 }
  0x28   : > { %p5088_p8 = pnand %p5087_p6, %p5081_p2 }
  0x2a   : > { %5091 = shalt.err (!%p5088_p8)
}
  0x2b   : > { %s6045_s20 = smov 256   ;;  %s5248_s22 = smov 16  }
  0x2c   : > { %4425 = dma.hbm_to_vmem [thread:$0]  (!%p5340_p5), %s5338_s15, 1024, %s5344_s17, %s5348_s19, %s6045_s20, %s6045_s20, %s5248_s22  }
  0x2d   : > { %s4400_s23 = smul.u32 3072, %s5331_s10  ;;  %s6054_s3 = sld [smem:[#allocation14_spill]] }
  0x2e   : > { %s4401_s29 = smul.u32 49152, %s5244_s27  ;;  %s5390_s16 = sadd.s32 4294967295, %s5244_s27  }
  0x2f   : > { %s300_s13 = scalar_lea.vmem [#allocation7], %s4400_s23  ;;  %s5394_s1 = scalar_lea.sflag [#allocation8], %s256_s9 }
  0x30   : > { %s307_s14 = sshll.u32 %s300_s13, 4  ;;  %s5387_s14 = int_to_ptr.vmem [resolvable:$true] %s307_s14 }
  0x33   : > { %s5385_s12 = scalar_lea.hbm %s6054_s3, %s4401_s29  ;;  %s5097_s30 = scalar_lea.hbm %s6054_s3, 147456 }
  0x34   : > { %s5092_s15 = scalar_lea.hbm %s5385_s12, 49152  ;;  %p5098_p12 = scmp.lt.s32.totalorder %s5385_s12, %s6054_s3 }
  0x35   : > { %p5093_p9 = scmp.ne.s32.totalorder %s5385_s12, %s5092_s15  ;;  %p5099_p13 = scmp.lt.s32.totalorder %s5097_s30, %s5092_s15 }
  0x37   : > { %p5095_p10 = pnand %p5093_p9, %p5354_p7  ;;  %p5100_p0 = por %p5099_p13, %p5098_p12 }
  0x39   : > { %p5096_p11 = pneg %p5095_p10 }
  0x3b   : > { %p5101_p1 = pnand %p5100_p0, %p5096_p11 }
  0x3d   : > { %5104 = shalt.err (!%p5101_p1)
}
  0x3e   : > { %s5105_s9 = scalar_lea.vmem %s5387_s14, 49152  ;;  %s5249_s23 = smov [#allocation7]  }
  0x3f   : > { %p5106_p2 = scmp.ne.s32.totalorder %s5387_s14, %s5105_s9  ;;  %s5110_s13 = sshll.u32 %s5249_s23, 4  ;;  %s5111_s13 = int_to_ptr.vmem [resolvable:$false] %s5110_s13 }
  0x40   : > { %s5112_s17 = scalar_lea.vmem %s5111_s13, 98304  ;;  %p5113_p6 = scmp.lt.s32.totalorder %s5387_s14, %s5111_s13 }
  0x41   : > { %p5108_p3 = pnand %p5106_p2, %p5354_p7  ;;  %p5114_p8 = scmp.lt.s32.totalorder %s5112_s17, %s5105_s9 }
  0x43   : > { %p5109_p4 = pneg %p5108_p3  ;;  %p5115_p9 = por %p5114_p8, %p5113_p6 }
  0x45   : > { %p5116_p10 = pnand %p5115_p9, %p5109_p4 }
  0x47   : > { %5119 = shalt.err (!%p5116_p10)
}
  0x48   : > { %s6055_s20 = smov 256   ;;  %p65_p11 = scmp.ne.s32.totalorder %s5236_s25, %s5232_s24 }
  0x49   : > { %4431 = dma.hbm_to_vmem [thread:$0]  (!%p5340_p5), %s5385_s12, 49152, %s5387_s14, %s5394_s1, %s6055_s20, %s6055_s20, %s5248_s22  }
  0x4a   : > { %p6046_p12 = scmp.eq.s32.totalorder %s5390_s16, 0  ;;  %p3726_p13 = scmp.ge.s32.totalorder %s5244_s27, 1 }
  0x4b   : > { %p232_p0 = scmp.lt.s32.totalorder %s5244_s27, 4  ;;  %s5250_s30 = smov [#allocation2]  }
  0x4c   : > { %p5427_p1 = por %p6046_p12, %p65_p11  ;;  %s245_s11 = sshll.u32 %s5250_s30, 4  ;;  %s246_s11 = int_to_ptr.vmem [resolvable:$true] %s245_s11 }
  0x4d   : > { %p5431_p2 = pnand %p3726_p13, %p232_p0  ;;  %s3732_s9 = sshll.u32 %s5331_s10, 2 }
  0x4e   : > { %s6056_s15 = scalar_select %p5427_p1, 1, 0 }
  0x4f   : > { %s6057_s29 = scalar_select %p5431_p2, 1, 0 }
  0x50   : > { %p4418_p3 = pneg %p5431_p2  ;;  %s4399_s24 = sshll.u32 %s5244_s27, 6 }
  0x51   : > { %s5448_s23 = scalar_lea.hbm %s6039_s2, %s4399_s24  ;;  %s281_s13 = scalar_lea.vmem [#allocation6], %s3732_s9 }
  0x52   : > { %p5441_p4 = pnand %p4418_p3, %p6046_p12  ;;  %s289_s17 = sshll.u32 %s281_s13, 4  ;;  %s5451_s17 = int_to_ptr.vmem [resolvable:$true] %s289_s17 }
  0x53   : > { %s5131_s30 = scalar_lea.vmem %s246_s11, 128  ;;  %p5139_p11 = scmp.lt.s32.totalorder %s246_s11, %s246_s11 }
  0x54   : > { %p5122_p6 = pneg %p5441_p4  ;;  %p5132_p8 = scmp.ne.s32.totalorder %s246_s11, %s5131_s30 }
  0x55   : > { %p5140_p13 = scmp.lt.s32.totalorder %s5131_s30, %s5131_s30 }
  0x56   : > { %p5134_p9 = pnand %p5132_p8, %p5122_p6 }
  0x57   : > { %p5141_p0 = por %p5140_p13, %p5139_p11 }
  0x58   : > { %p5135_p10 = pneg %p5134_p9 }
  0x5a   : > { %p5142_p3 = pnand %p5141_p0, %p5135_p10 }
  0x5c   : > { %5145 = shalt.err (!%p5142_p3)
}
  0x5d   : > { %4421 = dma.hbm_to_vmem [thread:$0]  (!%p5441_p4), %s6037_s0, 128, %s246_s11, [#allocation3]  }
  0x5e   : > { %s5146_s9 = scalar_lea.hbm %s5448_s23, 64  ;;  %s5151_s30 = scalar_lea.hbm %s6039_s2, 192 }
  0x5f   : > { %p5147_p12 = scmp.ne.s32.totalorder %s5448_s23, %s5146_s9  ;;  %p5152_p9 = scmp.lt.s32.totalorder %s5448_s23, %s6039_s2 }
  0x60   : > { %p5153_p10 = scmp.lt.s32.totalorder %s5151_s30, %s5146_s9 }
  0x61   : > { %p5149_p6 = pnand %p5147_p12, %p5354_p7 }
  0x62   : > { %p5154_p11 = por %p5153_p10, %p5152_p9 }
  0x63   : > { %p5150_p8 = pneg %p5149_p6 }
  0x65   : > { %p5155_p13 = pnand %p5154_p11, %p5150_p8 }
  0x67   : > { %5158 = shalt.err (!%p5155_p13)
}
  0x68   : > { %s5159_s11 = scalar_lea.vmem %s5451_s17, 64  ;;  %s5251_s22 = smov [#allocation6]  }
  0x69   : > { %p5160_p4 = scmp.ne.s32.totalorder %s5451_s17, %s5159_s11  ;;  %s5164_s24 = sshll.u32 %s5251_s22, 4  ;;  %s5165_s24 = int_to_ptr.vmem [resolvable:$false] %s5164_s24 }
  0x6a   : > { %s5166_s12 = scalar_lea.vmem %s5165_s24, 128  ;;  %p5167_p3 = scmp.lt.s32.totalorder %s5451_s17, %s5165_s24 }
  0x6b   : > { %p5162_p12 = pnand %p5160_p4, %p5354_p7  ;;  %p5168_p6 = scmp.lt.s32.totalorder %s5166_s12, %s5159_s11 }
  0x6d   : > { %p5163_p0 = pneg %p5162_p12  ;;  %p5169_p1 = por %p5168_p6, %p5167_p3 }
  0x6f   : > { %p5170_p2 = pnand %p5169_p1, %p5163_p0 }
  0x71   : > { %5173 = shalt.err (!%p5170_p2)
}
  0x72   : > { %4428 = dma.hbm_to_vmem [thread:$0]  (!%p5340_p5), %s5448_s23, 64, %s5451_s17, %s5348_s19  }
  0x73   : > { %s4403_s3 = smul.u32 192, %s5244_s27 }
  0x74   : > { %s6059_s20 = smul.u32 12, %s5331_s10  ;;  %s5179_s10 = scalar_lea.hbm %s6041_s4, 576 }
  0x75   : > { %s5487_s11 = scalar_lea.hbm %s6041_s4, %s4403_s3 }
  0x76   : > { %s321_s9 = scalar_lea.vmem [#allocation9], %s6059_s20  ;;  %s5174_s22 = scalar_lea.hbm %s5487_s11, 192 }
  0x77   : > { %s328_s14 = sshll.u32 %s321_s9, 4  ;;  %p5175_p1 = scmp.ne.s32.totalorder %s5487_s11, %s5174_s22  ;;  %s5489_s14 = int_to_ptr.vmem [resolvable:$true] %s328_s14 }
  0x78   : > { %p5180_p9 = scmp.lt.s32.totalorder %s5487_s11, %s6041_s4  ;;  %p5181_p10 = scmp.lt.s32.totalorder %s5179_s10, %s5174_s22 }
  0x79   : > { %p5177_p2 = pnand %p5175_p1, %p5354_p7 }
  0x7a   : > { %p5182_p11 = por %p5181_p10, %p5180_p9 }
  0x7b   : > { %p5178_p8 = pneg %p5177_p2 }
  0x7d   : > { %p5183_p13 = pnand %p5182_p11, %p5178_p8 }
  0x7f   : > { %5186 = shalt.err (!%p5183_p13)
}
  0x80   : > { %s5187_s24 = scalar_lea.vmem %s5489_s14, 192  ;;  %s5252_s12 = smov [#allocation9]  }
  0x81   : > { %p5188_p4 = scmp.ne.s32.totalorder %s5489_s14, %s5187_s24  ;;  %s5192_s3 = sshll.u32 %s5252_s12, 4  ;;  %s5193_s3 = int_to_ptr.vmem [resolvable:$false] %s5192_s3 }
  0x82   : > { %s5194_s20 = scalar_lea.vmem %s5193_s3, 384  ;;  %p5195_p3 = scmp.lt.s32.totalorder %s5489_s14, %s5193_s3 }
  0x83   : > { %p5190_p12 = pnand %p5188_p4, %p5354_p7  ;;  %p5196_p6 = scmp.lt.s32.totalorder %s5194_s20, %s5187_s24 }
  0x85   : > { %p5191_p0 = pneg %p5190_p12  ;;  %p5197_p1 = por %p5196_p6, %p5195_p3 }
  0x87   : > { %p5198_p2 = pnand %p5197_p1, %p5191_p0 }
  0x89   : > { %5201 = shalt.err (!%p5198_p2)
}
  0x8a   : > { %s5253_s9 = smov 64   ;;  %s5254_s13 = smov 4  }
  0x8b   : > { %4434 = dma.hbm_to_vmem [thread:$0]  (!%p5340_p5), %s5487_s11, 192, %s5489_s14, %s5394_s1, %s5253_s9, %s5253_s9, %s5254_s13  }
  0x8c   : > { %p6060_p7 = scmp.ne.s32.totalorder %s6057_s29, 0 }
  0x8d   : > { %p6061_p8 = scmp.eq.s32.totalorder (!%p6060_p7), %s5390_s16, 0 }
  0x8e   : > { %353 = sbr.rel (%p6060_p7) target bundleno = 1311 (0x51f), region = 48 }
  0x93   : > { %5219 = dma.done.wait (%p6061_p8), [#allocation3], 128   ;;  %p6062_p9 = pmov %p6061_p8 }
  0x94   : > { %s359_s21 = sand.u32 1, %s5390_s16   ;;  %s5520_s30 = sand.u32 1, %s5236_s25  }
  0x95   : > { %5221 = vsyncadd (%p6062_p9), [#allocation3], 4294967168  ;;  %s3739_s22 = sshll.u32 %s5520_s30, 6  ;;  %s360_s19 = scalar_lea.sflag [#allocation5], %s359_s21 }
  0x96   : > { %s363_s18 = scalar_lea.vmem [#allocation4], %s3739_s22  ;;  %p6063_p5 = scmp.ne.s32.totalorder %s6056_s15, 0 }
  0x98   : > { %5223 = dma.done.wait (%p6063_p5), %s360_s19, 1088  }
  0x99   : > { %5225 = vsyncadd (%p6063_p5), %s360_s19, 4294966208  ;;  %s3740_s1 = sshll.u32 %s5520_s30, 2  ;;  %s4404_s29 = smul.u32 3072, %s5520_s30 }
  0x9a   : > { %s5529_s14 = scalar_lea.vmem [#allocation6], %s3740_s1  ;;  %s378_s11 = scalar_lea.sflag [#allocation8], %s359_s21 }
  0x9b   : > { %s5531_s27 = scalar_lea.vmem [#allocation7], %s4404_s29 }
  0x9c   : > { %5227 = dma.done.wait (%p6063_p5), %s378_s11, 49344  }
  0x9d   : > { %5229 = vsyncadd (%p6063_p5), %s378_s11, 4294917952  ;;  %v5255_v0 = vmov 0   ;;  %v4476_v1 = vld [vmem:[%s363_s18 + $0x24] ss:$16 sps:$4 sm:$0xff]   ;;  %v4478_v2 = vld [vmem:[%s363_s18 + $0x2c] ss:$16 sps:$4 sm:$0xff]  }
  0x9e   : > { %562 = vmatprep.mubr.bf16.mxu0 %v5255_v0  ;;  %603 = vmatprep.mubr.bf16.mxu1 %v5255_v0  ;;  %v4480_v3 = vld [vmem:[%s363_s18 + $0x20] ss:$16 sps:$4 sm:$0xff]   ;;  %v4481_v4 = vld [vmem:[%s363_s18 + $0x28] ss:$16 sps:$4 sm:$0xff]   ;;  %v4482_v5 = vld [vmem:[%s363_s18 + $0x4] ss:$16 sps:$4 sm:$0xff]  }
  0x9f   : > { %542 = vmatprep.subr.bf16.mxu0 %v4476_v1  ;;  %583 = vmatprep.subr.bf16.mxu1 %v4478_v2  ;;  %v4484_v6 = vld [vmem:[%s363_s18 + $0xc] ss:$16 sps:$4 sm:$0xff]   ;;  %v4486_v7 = vld [vmem:[%s363_s18] ss:$16 sps:$4 sm:$0xff]   ;;  %v4487_v8 = vld [vmem:[%s363_s18 + $0x8] ss:$16 sps:$4 sm:$0xff]  }
  0xa0   : > { %543 = vmatpush1.bf16.msra.mxu0 %v4480_v3  ;;  %584 = vmatpush1.bf16.msra.mxu1 %v4481_v4  ;;  %v454_v9 = vld [vmem:[#allocation2] sm:$0xff]  ;;  %vm526_vm0 = vcmask 261120   ;;  %s4405_s15 = smul.u32 12, %s5520_s30  ;;  %p442_p10 = scmp.lt.s32.totalorder %s5390_s16, 2  ;;  %vm3562_vm1 = vcmask 7168  }
  0xa1   : > { %544 = vmatprep.subr.bf16.mxu0 %v4482_v5  ;;  %585 = vmatprep.subr.bf16.mxu1 %v4484_v6  ;;  %v4488_v10 = vld [vmem:[%s5531_s27 + $0xe0] ss:$16 sps:$4 sm:$0xff]   ;;  %v4490_v11 = vld [vmem:[%s5531_s27 + $0xe4] ss:$16 sps:$4 sm:$0xff]   ;;  %v455_v12 = vpack.c.bf16 %v454_v9, %v454_v9 }
  0xa2   : > { %v4491_v13 = vld [vmem:[%s5531_s27 + $0x2e0] ss:$16 sps:$4 sm:$0xff]   ;;  %v4493_v14 = vld [vmem:[%s5531_s27 + $0x2e4] ss:$16 sps:$4 sm:$0xff]   ;;  %s5759_s10 = scalar_lea.vmem [#allocation9], %s4405_s15  ;;  %s6069_s16 = smov (!%p442_p10, %s5390_s16), 2 }
  0xa3   : > { %v4496_v15 = vld [vmem:[%s5531_s27 + $0xc4] ss:$16 sps:$4 sm:$0xff]   ;;  %v4494_v17 = vld [vmem:[%s5531_s27 + $0xc0] ss:$16 sps:$4 sm:$0xff]   ;;  %s3741_s23 = sshll.u32 %s6069_s16, 2  ;;  %s448_s9 = scalar_lea.vmem %s6043_s6, %s6069_s16 }
  0xa4   : > { %545 = vmatpush1.bf16.msra.mxu0 %v4486_v7  ;;  %586 = vmatpush1.bf16.msra.mxu1 %v4487_v8  ;;  %v4499_v16 = vld [vmem:[%s5531_s27 + $0x2c4] ss:$16 sps:$4 sm:$0xff]   ;;  %v4497_v18 = vld [vmem:[%s5531_s27 + $0x2c0] ss:$16 sps:$4 sm:$0xff]   ;;  %s445_s12 = scalar_lea.vmem %s6042_s5, %s3741_s23  ;;  %s3742_s13 = sshll.u32 %s6069_s16, 3 }
  0xa5   : > { %1410 = vmatprep.subr.bf16.mxu0 %v4490_v11  ;;  %1451 = vmatprep.subr.bf16.mxu1 %v4493_v14  ;;  %v4502_v19 = vld [vmem:[%s5531_s27 + $0xa4] ss:$16 sps:$4 sm:$0xff]   ;;  %v4500_v21 = vld [vmem:[%s5531_s27 + $0xa0] ss:$16 sps:$4 sm:$0xff]   ;;  %v4586_v11 = vld [vmem:[%s5531_s27 + $0xec] ss:$16 sps:$4 sm:$0xff]   ;;  %s452_s22 = scalar_lea.vmem %s6044_s7, %s3742_s13 }
  0xa6   : > { %v4505_v20 = vld [vmem:[%s5531_s27 + $0x2a4] ss:$16 sps:$4 sm:$0xff]   ;;  %v4503_v22 = vld [vmem:[%s5531_s27 + $0x2a0] ss:$16 sps:$4 sm:$0xff]  }
  0xa7   : > { %3751 = vmatmul.mubr.msk.bf16.vlgmr.msra.gmra.mxu0 %vm526_vm0, %v455_v12  ;;  %3752 = vmatmul.mubr.msk.bf16.vlgmr.msra.gmra.mxu1 %vm526_vm0, %v455_v12  ;;  %v4508_v23 = vld [vmem:[%s5531_s27 + $0x84] ss:$16 sps:$4 sm:$0xff]   ;;  %v4506_v25 = vld [vmem:[%s5531_s27 + $0x80] ss:$16 sps:$4 sm:$0xff]   ;;  %v4589_v12 = vld [vmem:[%s5531_s27 + $0x2ec] ss:$16 sps:$4 sm:$0xff]  }
  0xa8   : > { %1411 = vmatpush1.bf16.msra.mxu0 %v4488_v10  ;;  %1452 = vmatpush1.bf16.msra.mxu1 %v4491_v13  ;;  %v4511_v24 = vld [vmem:[%s5531_s27 + $0x284] ss:$16 sps:$4 sm:$0xff]   ;;  %v4509_v26 = vld [vmem:[%s5531_s27 + $0x280] ss:$16 sps:$4 sm:$0xff]   ;;  %v466_v13 = vlaneseq }
  0xa9   : > { %1412 = vmatprep.subr.bf16.mxu0 %v4496_v15  ;;  %1453 = vmatprep.subr.bf16.mxu1 %v4499_v16  ;;  %v4514_v27 = vld [vmem:[%s5531_s27 + $0x64] ss:$16 sps:$4 sm:$0xff]   ;;  %v4512_v29 = vld [vmem:[%s5531_s27 + $0x60] ss:$16 sps:$4 sm:$0xff]  }
  0xaa   : > { %v4517_v28 = vld [vmem:[%s5531_s27 + $0x264] ss:$16 sps:$4 sm:$0xff]   ;;  %v4515_v30 = vld [vmem:[%s5531_s27 + $0x260] ss:$16 sps:$4 sm:$0xff]   ;;  %v5603_v14 = vshrl.u32 %v466_v13, 7 }
  0xab   : > { %v4520_v31 = vld [vmem:[%s5531_s27 + $0x44] ss:$16 sps:$4 sm:$0xff]   ;;  %v4518_v33 = vld [vmem:[%s5531_s27 + $0x40] ss:$16 sps:$4 sm:$0xff]   ;;  %v4635_v13 = vld [vmem:[%s5531_s27 + $0x3e8] ss:$16 sps:$4 sm:$0xff]  }
  0xac   : > { %1413 = vmatpush1.bf16.msra.mxu0 %v4494_v17  ;;  %1454 = vmatpush1.bf16.msra.mxu1 %v4497_v18  ;;  %v4523_v32 = vld [vmem:[%s5531_s27 + $0x244] ss:$16 sps:$4 sm:$0xff]   ;;  %v4521_v34 = vld [vmem:[%s5531_s27 + $0x240] ss:$16 sps:$4 sm:$0xff]   ;;  %v5606_v15 = vsub.s32 0, %v5603_v14  ;;  %v5609_v16 = vsub.s32 2, %v5603_v14 }
  0xad   : > { %1414 = vmatprep.subr.bf16.mxu0 %v4502_v19  ;;  %1455 = vmatprep.subr.bf16.mxu1 %v4505_v20  ;;  %v4526_v35 = vld [vmem:[%s5531_s27 + $0x24] ss:$16 sps:$4 sm:$0xff]   ;;  %v4524_v37 = vld [vmem:[%s5531_s27 + $0x20] ss:$16 sps:$4 sm:$0xff]   ;;  %v464_v17 = vld [vmem:[%s5529_s14] sm:$0xf] }
  0xae   : > { %v4529_v36 = vld [vmem:[%s5531_s27 + $0x224] ss:$16 sps:$4 sm:$0xff]   ;;  %v4527_v38 = vld [vmem:[%s5531_s27 + $0x220] ss:$16 sps:$4 sm:$0xff]   ;;  %v5613_v18 = vsub.s32 1, %v5603_v14  ;;  %v5616_v19 = vsub.s32 3, %v5603_v14  ;;  %v469_v20 = vrot.slane %v464_v17, %v5606_v15 }
  0xaf   : > { %v4532_v39 = vld [vmem:[%s5531_s27 + $0x4] ss:$16 sps:$4 sm:$0xff]   ;;  %v4530_v41 = vld [vmem:[%s5531_s27] ss:$16 sps:$4 sm:$0xff]  }
  0xb0   : > { %1415 = vmatpush1.bf16.msra.mxu0 %v4500_v21  ;;  %1456 = vmatpush1.bf16.msra.mxu1 %v4503_v22  ;;  %v4535_v40 = vld [vmem:[%s5531_s27 + $0x204] ss:$16 sps:$4 sm:$0xff]   ;;  %v4533_v42 = vld [vmem:[%s5531_s27 + $0x200] ss:$16 sps:$4 sm:$0xff]   ;;  %v477_v21 = vrot.slane %v464_v17, %v5609_v16  ;;  %v473_v22 = vrot.slane %v464_v17, %v5613_v18 }
  0xb1   : > { %1416 = vmatprep.subr.bf16.mxu0 %v4508_v23  ;;  %1457 = vmatprep.subr.bf16.mxu1 %v4511_v24  ;;  %v4538_v43 = vld [vmem:[%s5531_s27 + $0x1e4] ss:$16 sps:$4 sm:$0xff]   ;;  %v4536_v45 = vld [vmem:[%s5531_s27 + $0x1e0] ss:$16 sps:$4 sm:$0xff]   ;;  %v481_v23 = vrot.slane %v464_v17, %v5616_v19  ;;  %v4640_v17 = vld [vmem:[%s5531_s27 + $0x1cc] ss:$16 sps:$4 sm:$0xff]  }
  0xb2   : > { %v4541_v44 = vld [vmem:[%s5531_s27 + $0x3e4] ss:$16 sps:$4 sm:$0xff]   ;;  %v4539_v46 = vld [vmem:[%s5531_s27 + $0x3e0] ss:$16 sps:$4 sm:$0xff]  }
  0xb3   : > { %v4544_v47 = vld [vmem:[%s5531_s27 + $0x1c4] ss:$16 sps:$4 sm:$0xff]   ;;  %v4542_v49 = vld [vmem:[%s5531_s27 + $0x1c0] ss:$16 sps:$4 sm:$0xff]  }
  0xb4   : > { %1417 = vmatpush1.bf16.msra.mxu0 %v4506_v25  ;;  %1458 = vmatpush1.bf16.msra.mxu1 %v4509_v26  ;;  %v4547_v48 = vld [vmem:[%s5531_s27 + $0x3c4] ss:$16 sps:$4 sm:$0xff]   ;;  %v4545_v50 = vld [vmem:[%s5531_s27 + $0x3c0] ss:$16 sps:$4 sm:$0xff]  }
  0xb5   : > { %1418 = vmatprep.subr.bf16.mxu0 %v4514_v27  ;;  %1459 = vmatprep.subr.bf16.mxu1 %v4517_v28  ;;  %v4550_v51 = vld [vmem:[%s5531_s27 + $0x1a4] ss:$16 sps:$4 sm:$0xff]   ;;  %v4548_v53 = vld [vmem:[%s5531_s27 + $0x1a0] ss:$16 sps:$4 sm:$0xff]  }
  0xb6   : > { %v4553_v52 = vld [vmem:[%s5531_s27 + $0x3a4] ss:$16 sps:$4 sm:$0xff]   ;;  %v4551_v54 = vld [vmem:[%s5531_s27 + $0x3a0] ss:$16 sps:$4 sm:$0xff]  }
  0xb7   : > { %v4556_v55 = vld [vmem:[%s5531_s27 + $0x184] ss:$16 sps:$4 sm:$0xff]   ;;  %v4554_v57 = vld [vmem:[%s5531_s27 + $0x180] ss:$16 sps:$4 sm:$0xff]  }
  0xb8   : > { %1419 = vmatpush1.bf16.msra.mxu0 %v4512_v29  ;;  %1460 = vmatpush1.bf16.msra.mxu1 %v4515_v30  ;;  %v4559_v56 = vld [vmem:[%s5531_s27 + $0x384] ss:$16 sps:$4 sm:$0xff]   ;;  %v4557_v58 = vld [vmem:[%s5531_s27 + $0x380] ss:$16 sps:$4 sm:$0xff]  }
  0xb9   : > { %1420 = vmatprep.subr.bf16.mxu0 %v4520_v31  ;;  %1461 = vmatprep.subr.bf16.mxu1 %v4523_v32  ;;  %v4562_v59 = vld [vmem:[%s5531_s27 + $0x164] ss:$16 sps:$4 sm:$0xff]   ;;  %v4560_v61 = vld [vmem:[%s5531_s27 + $0x160] ss:$16 sps:$4 sm:$0xff]  }
  0xba   : > { %v4565_v60 = vld [vmem:[%s5531_s27 + $0x364] ss:$16 sps:$4 sm:$0xff]   ;;  %v4563_v62 = vld [vmem:[%s5531_s27 + $0x360] ss:$16 sps:$4 sm:$0xff]  }
  0xbb   : > { %v4568_v63 = vld [vmem:[%s5531_s27 + $0x144] ss:$16 sps:$4 sm:$0xff]   ;;  %v4566_v1 = vld [vmem:[%s5531_s27 + $0x140] ss:$16 sps:$4 sm:$0xff]  }
  0xbc   : > { %1421 = vmatpush1.bf16.msra.mxu0 %v4518_v33  ;;  %1462 = vmatpush1.bf16.msra.mxu1 %v4521_v34  ;;  %v4571_v0 = vld [vmem:[%s5531_s27 + $0x344] ss:$16 sps:$4 sm:$0xff]   ;;  %v4569_v2 = vld [vmem:[%s5531_s27 + $0x340] ss:$16 sps:$4 sm:$0xff]  }
  0xbd   : > { %1422 = vmatprep.subr.bf16.mxu0 %v4526_v35  ;;  %1463 = vmatprep.subr.bf16.mxu1 %v4529_v36  ;;  %v4574_v3 = vld [vmem:[%s5531_s27 + $0x124] ss:$16 sps:$4 sm:$0xff]   ;;  %v4572_v5 = vld [vmem:[%s5531_s27 + $0x120] ss:$16 sps:$4 sm:$0xff]  }
  0xbe   : > { %v4577_v4 = vld [vmem:[%s5531_s27 + $0x324] ss:$16 sps:$4 sm:$0xff]   ;;  %v4575_v6 = vld [vmem:[%s5531_s27 + $0x320] ss:$16 sps:$4 sm:$0xff]  }
  0xbf   : > { %v4580_v7 = vld [vmem:[%s5531_s27 + $0x104] ss:$16 sps:$4 sm:$0xff]   ;;  %v4578_v9 = vld [vmem:[%s5531_s27 + $0x100] ss:$16 sps:$4 sm:$0xff]  }
  0xc0   : > { %1423 = vmatpush1.bf16.msra.mxu0 %v4524_v37  ;;  %1464 = vmatpush1.bf16.msra.mxu1 %v4527_v38  ;;  %v4583_v8 = vld [vmem:[%s5531_s27 + $0x304] ss:$16 sps:$4 sm:$0xff]   ;;  %v4581_v10 = vld [vmem:[%s5531_s27 + $0x300] ss:$16 sps:$4 sm:$0xff]  }
  0xc1   : > { %1424 = vmatprep.subr.bf16.mxu0 %v4532_v39  ;;  %1465 = vmatprep.subr.bf16.mxu1 %v4535_v40 }
  0xc4   : > { %1425 = vmatpush1.bf16.msra.mxu0 %v4530_v41  ;;  %1466 = vmatpush1.bf16.msra.mxu1 %v4533_v42 }
  0xc5   : > { %1426 = vmatprep.subr.bf16.mxu0 %v4538_v43  ;;  %1467 = vmatprep.subr.bf16.mxu1 %v4541_v44  ;;  %v4584_v43 = vld [vmem:[%s5531_s27 + $0xe8] ss:$16 sps:$4 sm:$0xff]  }
  0xc6   : > { %v4587_v44 = vld [vmem:[%s5531_s27 + $0x2e8] ss:$16 sps:$4 sm:$0xff]  }
  0xc8   : > { %1427 = vmatpush2.bf16.msra.mxu0 %v4536_v45  ;;  %1468 = vmatpush2.bf16.msra.mxu1 %v4539_v46  ;;  %v4592_v46 = vld [vmem:[%s5531_s27 + $0xcc] ss:$16 sps:$4 sm:$0xff]  }
  0xc9   : > { %1428 = vmatprep.subr.bf16.mxu0 %v4544_v47  ;;  %1469 = vmatprep.subr.bf16.mxu1 %v4547_v48  ;;  %v4595_v47 = vld [vmem:[%s5531_s27 + $0x2cc] ss:$16 sps:$4 sm:$0xff]   ;;  %v4590_v48 = vld [vmem:[%s5531_s27 + $0xc8] ss:$16 sps:$4 sm:$0xff]  }
  0xcc   : > { %1429 = vmatpush2.bf16.msra.mxu0 %v4542_v49  ;;  %1470 = vmatpush2.bf16.msra.mxu1 %v4545_v50  ;;  %v4593_v49 = vld [vmem:[%s5531_s27 + $0x2c8] ss:$16 sps:$4 sm:$0xff]   ;;  %v4598_v50 = vld [vmem:[%s5531_s27 + $0xac] ss:$16 sps:$4 sm:$0xff]  }
  0xcd   : > { %1430 = vmatprep.subr.bf16.mxu0 %v4550_v51  ;;  %1471 = vmatprep.subr.bf16.mxu1 %v4553_v52  ;;  %v4601_v51 = vld [vmem:[%s5531_s27 + $0x2ac] ss:$16 sps:$4 sm:$0xff]   ;;  %v4596_v52 = vld [vmem:[%s5531_s27 + $0xa8] ss:$16 sps:$4 sm:$0xff]  }
  0xd0   : > { %1431 = vmatpush2.bf16.msra.mxu0 %v4548_v53  ;;  %1472 = vmatpush2.bf16.msra.mxu1 %v4551_v54  ;;  %v4599_v53 = vld [vmem:[%s5531_s27 + $0x2a8] ss:$16 sps:$4 sm:$0xff]   ;;  %v4604_v54 = vld [vmem:[%s5531_s27 + $0x8c] ss:$16 sps:$4 sm:$0xff]  }
  0xd1   : > { %1432 = vmatprep.subr.bf16.mxu0 %v4556_v55  ;;  %1473 = vmatprep.subr.bf16.mxu1 %v4559_v56  ;;  %v4607_v55 = vld [vmem:[%s5531_s27 + $0x28c] ss:$16 sps:$4 sm:$0xff]   ;;  %v4602_v56 = vld [vmem:[%s5531_s27 + $0x88] ss:$16 sps:$4 sm:$0xff]  }
  0xd4   : > { %1433 = vmatpush2.bf16.msra.mxu0 %v4554_v57  ;;  %1474 = vmatpush2.bf16.msra.mxu1 %v4557_v58  ;;  %v4605_v57 = vld [vmem:[%s5531_s27 + $0x288] ss:$16 sps:$4 sm:$0xff]   ;;  %v4610_v58 = vld [vmem:[%s5531_s27 + $0x6c] ss:$16 sps:$4 sm:$0xff]  }
  0xd5   : > { %1434 = vmatprep.subr.bf16.mxu0 %v4562_v59  ;;  %1475 = vmatprep.subr.bf16.mxu1 %v4565_v60  ;;  %v4613_v59 = vld [vmem:[%s5531_s27 + $0x26c] ss:$16 sps:$4 sm:$0xff]   ;;  %v4608_v60 = vld [vmem:[%s5531_s27 + $0x68] ss:$16 sps:$4 sm:$0xff]  }
  0xd8   : > { %1435 = vmatpush2.bf16.msra.mxu0 %v4560_v61  ;;  %1476 = vmatpush2.bf16.msra.mxu1 %v4563_v62  ;;  %v4611_v61 = vld [vmem:[%s5531_s27 + $0x268] ss:$16 sps:$4 sm:$0xff]   ;;  %v4616_v62 = vld [vmem:[%s5531_s27 + $0x4c] ss:$16 sps:$4 sm:$0xff]  }
  0xd9   : > { %1436 = vmatprep.subr.bf16.mxu0 %v4568_v63  ;;  %1477 = vmatprep.subr.bf16.mxu1 %v4571_v0  ;;  %v4619_v63 = vld [vmem:[%s5531_s27 + $0x24c] ss:$16 sps:$4 sm:$0xff]   ;;  %v4614_v0 = vld [vmem:[%s5531_s27 + $0x48] ss:$16 sps:$4 sm:$0xff]  }
  0xdc   : > { %1437 = vmatpush2.bf16.msra.mxu0 %v4566_v1  ;;  %1478 = vmatpush2.bf16.msra.mxu1 %v4569_v2  ;;  %v4617_v1 = vld [vmem:[%s5531_s27 + $0x248] ss:$16 sps:$4 sm:$0xff]   ;;  %v4622_v2 = vld [vmem:[%s5531_s27 + $0x2c] ss:$16 sps:$4 sm:$0xff]  }
  0xdd   : > { %1438 = vmatprep.subr.bf16.mxu0 %v4574_v3  ;;  %1479 = vmatprep.subr.bf16.mxu1 %v4577_v4  ;;  %v4625_v3 = vld [vmem:[%s5531_s27 + $0x22c] ss:$16 sps:$4 sm:$0xff]   ;;  %v4620_v4 = vld [vmem:[%s5531_s27 + $0x28] ss:$16 sps:$4 sm:$0xff]  }
  0xe0   : > { %1439 = vmatpush2.bf16.msra.mxu0 %v4572_v5  ;;  %1480 = vmatpush2.bf16.msra.mxu1 %v4575_v6  ;;  %v4623_v5 = vld [vmem:[%s5531_s27 + $0x228] ss:$16 sps:$4 sm:$0xff]   ;;  %v4628_v6 = vld [vmem:[%s5531_s27 + $0xc] ss:$16 sps:$4 sm:$0xff]  }
  0xe1   : > { %1440 = vmatprep.subr.bf16.mxu0 %v4580_v7  ;;  %1481 = vmatprep.subr.bf16.mxu1 %v4583_v8  ;;  %v4631_v7 = vld [vmem:[%s5531_s27 + $0x20c] ss:$16 sps:$4 sm:$0xff]   ;;  %v4626_v8 = vld [vmem:[%s5531_s27 + $0x8] ss:$16 sps:$4 sm:$0xff]  }
  0xe4   : > { %1441 = vmatpush2.bf16.msra.mxu0 %v4578_v9  ;;  %1482 = vmatpush2.bf16.msra.mxu1 %v4581_v10  ;;  %v4629_v9 = vld [vmem:[%s5531_s27 + $0x208] ss:$16 sps:$4 sm:$0xff]   ;;  %v4634_v10 = vld [vmem:[%s5531_s27 + $0x1ec] ss:$16 sps:$4 sm:$0xff]  }
  0xe5   : > { %1492 = vmatprep.subr.bf16.mxu0 %v4586_v11  ;;  %1533 = vmatprep.subr.bf16.mxu1 %v4589_v12  ;;  %v4637_v11 = vld [vmem:[%s5531_s27 + $0x3ec] ss:$16 sps:$4 sm:$0xff]   ;;  %v4632_v12 = vld [vmem:[%s5531_s27 + $0x1e8] ss:$16 sps:$4 sm:$0xff]  }
 0x167   : > { %v564_v24 = vpop.f32.mrf.mxu0  ;;  %v605_v25 = vpop.f32.mrf.mxu1 }
 0x168   : > { %v565_v26 = vadd.f32 %v564_v24, %v469_v20  ;;  %v606_v27 = vadd.f32 %v605_v25, %v477_v21  ;;  %v4643_v20 = vld [vmem:[%s5531_s27 + $0x3cc] ss:$16 sps:$4 sm:$0xff]   ;;  %v4638_v21 = vld [vmem:[%s5531_s27 + $0x1c8] ss:$16 sps:$4 sm:$0xff]  }
 0x169   : > { %v566_v28 = vpop.f32.mrf.mxu0  ;;  %v607_v29 = vpop.f32.mrf.mxu1  ;;  %v4649_v24 = vld [vmem:[%s5531_s27 + $0x3ac] ss:$16 sps:$4 sm:$0xff]   ;;  %v4644_v25 = vld [vmem:[%s5531_s27 + $0x1a8] ss:$16 sps:$4 sm:$0xff]  }
 0x16a   : > { %v614_v30 = vmax.f32 %v606_v27, 0.0  ;;  %v567_v31 = vadd.f32 %v566_v28, %v473_v22  ;;  %v608_v32 = vadd.f32 %v607_v29, %v481_v23  ;;  %v612_v33 = vmax.f32 %v565_v26, 0.0  ;;  %v4641_v22 = vld [vmem:[%s5531_s27 + $0x3c8] ss:$16 sps:$4 sm:$0xff]   ;;  %v4646_v23 = vld [vmem:[%s5531_s27 + $0x1ac] ss:$16 sps:$4 sm:$0xff]  }
 0x16b   : > { %v568_v34 = vpop.f32.mrf.mxu0  ;;  %v609_v35 = vpop.f32.mrf.mxu1  ;;  %v4647_v26 = vld [vmem:[%s5531_s27 + $0x3a8] ss:$16 sps:$4 sm:$0xff]   ;;  %v4652_v27 = vld [vmem:[%s5531_s27 + $0x18c] ss:$16 sps:$4 sm:$0xff]  }
 0x16c   : > { %v613_v36 = vmax.f32 %v567_v31, 0.0  ;;  %v615_v37 = vmax.f32 %v608_v32, 0.0  ;;  %v5622_v38 = vpack.c.bf16 %v614_v30, %v614_v30  ;;  %v5626_v45 = vpack.c.bf16 %v612_v33, %v612_v33  ;;  %v4655_v28 = vld [vmem:[%s5531_s27 + $0x38c] ss:$16 sps:$4 sm:$0xff]   ;;  %v4650_v29 = vld [vmem:[%s5531_s27 + $0x188] ss:$16 sps:$4 sm:$0xff]  }
 0x16d   : > { %v569_v39 = vpop.f32.mrf.mxu0  ;;  %v610_v40 = vpop.f32.mrf.mxu1  ;;  %v4653_v30 = vld [vmem:[%s5531_s27 + $0x388] ss:$16 sps:$4 sm:$0xff]   ;;  %v4658_v31 = vld [vmem:[%s5531_s27 + $0x16c] ss:$16 sps:$4 sm:$0xff]  }
 0x16e   : > { %v617_v41 = vpack.c.bf16 %v613_v36, %v613_v36  ;;  %v619_v42 = vpack.c.bf16 %v615_v37, %v615_v37  ;;  %v4661_v32 = vld [vmem:[%s5531_s27 + $0x36c] ss:$16 sps:$4 sm:$0xff]   ;;  %v4656_v33 = vld [vmem:[%s5531_s27 + $0x168] ss:$16 sps:$4 sm:$0xff]  }
 0x16f   : > { %v4659_v34 = vld [vmem:[%s5531_s27 + $0x368] ss:$16 sps:$4 sm:$0xff]   ;;  %v4664_v35 = vld [vmem:[%s5531_s27 + $0x14c] ss:$16 sps:$4 sm:$0xff]  }
 0x170   : > { %1442 = vmatprep.mubr.bf16.mxu0 %v617_v41  ;;  %1483 = vmatprep.mubr.bf16.mxu1 %v619_v42  ;;  %v4667_v36 = vld [vmem:[%s5531_s27 + $0x34c] ss:$16 sps:$4 sm:$0xff]   ;;  %v4662_v37 = vld [vmem:[%s5531_s27 + $0x148] ss:$16 sps:$4 sm:$0xff]  }
 0x171   : > { %1443 = vmatmul.mubr.bf16.vlgmr.msra.gmra.mxu0 %v5626_v45  ;;  %1484 = vmatmul.mubr.bf16.vlgmr.msra.gmra.mxu1 %v5622_v38  ;;  %v4665_v39 = vld [vmem:[%s5531_s27 + $0x348] ss:$16 sps:$4 sm:$0xff]   ;;  %v4670_v40 = vld [vmem:[%s5531_s27 + $0x12c] ss:$16 sps:$4 sm:$0xff]  }
 0x172   : > { %1493 = vmatpush1.bf16.msra.mxu0 %v4584_v43  ;;  %1534 = vmatpush1.bf16.msra.mxu1 %v4587_v44  ;;  %v4671_v43 = vld [vmem:[%s5531_s27 + $0x328] ss:$16 sps:$4 sm:$0xff]   ;;  %v4676_v44 = vld [vmem:[%s5531_s27 + $0x10c] ss:$16 sps:$4 sm:$0xff]  }
 0x173   : > { %1524 = vmatprep.mubr.bf16.mxu0 %v617_v41  ;;  %1565 = vmatprep.mubr.bf16.mxu1 %v619_v42  ;;  %v4673_v41 = vld [vmem:[%s5531_s27 + $0x32c] ss:$16 sps:$4 sm:$0xff]   ;;  %v4668_v42 = vld [vmem:[%s5531_s27 + $0x128] ss:$16 sps:$4 sm:$0xff]  }
 0x174   : > { %1494 = vmatprep.subr.bf16.mxu0 %v4592_v46  ;;  %1535 = vmatprep.subr.bf16.mxu1 %v4595_v47  ;;  %v4679_v46 = vld [vmem:[%s5531_s27 + $0x30c] ss:$16 sps:$4 sm:$0xff]   ;;  %v4674_v47 = vld [vmem:[%s5531_s27 + $0x108] ss:$16 sps:$4 sm:$0xff]  }
 0x176   : > { %1495 = vmatpush1.bf16.msra.mxu0 %v4590_v48  ;;  %1536 = vmatpush1.bf16.msra.mxu1 %v4593_v49  ;;  %v4677_v48 = vld [vmem:[%s5531_s27 + $0x308] ss:$16 sps:$4 sm:$0xff]   ;;  %v4682_v49 = vld [vmem:[%s5531_s27 + $0x4e4] ss:$16 sps:$4 sm:$0xff]  }
 0x177   : > { %1496 = vmatprep.subr.bf16.mxu0 %v4598_v50  ;;  %1537 = vmatprep.subr.bf16.mxu1 %v4601_v51  ;;  %v4680_v50 = vld [vmem:[%s5531_s27 + $0x4e0] ss:$16 sps:$4 sm:$0xff]   ;;  %v4685_v51 = vld [vmem:[%s5531_s27 + $0x4c4] ss:$16 sps:$4 sm:$0xff]  }
 0x17a   : > { %1497 = vmatpush1.bf16.msra.mxu0 %v4596_v52  ;;  %1538 = vmatpush1.bf16.msra.mxu1 %v4599_v53  ;;  %v4683_v52 = vld [vmem:[%s5531_s27 + $0x4c0] ss:$16 sps:$4 sm:$0xff]   ;;  %v4688_v53 = vld [vmem:[%s5531_s27 + $0x4a4] ss:$16 sps:$4 sm:$0xff]  }
 0x17b   : > { %1498 = vmatprep.subr.bf16.mxu0 %v4604_v54  ;;  %1539 = vmatprep.subr.bf16.mxu1 %v4607_v55  ;;  %v4686_v54 = vld [vmem:[%s5531_s27 + $0x4a0] ss:$16 sps:$4 sm:$0xff]   ;;  %v4691_v55 = vld [vmem:[%s5531_s27 + $0x484] ss:$16 sps:$4 sm:$0xff]  }
 0x17e   : > { %1499 = vmatpush1.bf16.msra.mxu0 %v4602_v56  ;;  %1540 = vmatpush1.bf16.msra.mxu1 %v4605_v57  ;;  %v4689_v56 = vld [vmem:[%s5531_s27 + $0x480] ss:$16 sps:$4 sm:$0xff]  }
 0x17f   : > { %1500 = vmatprep.subr.bf16.mxu0 %v4610_v58  ;;  %1541 = vmatprep.subr.bf16.mxu1 %v4613_v59  ;;  %v4728_v57 = vld [vmem:[%s5531_s27 + $0x6e0] ss:$16 sps:$4 sm:$0xff]  }
 0x180   : > { %v4692_v58 = vld [vmem:[%s5531_s27 + $0x460] ss:$16 sps:$4 sm:$0xff]  }
 0x181   : > { %v4734_v59 = vld [vmem:[%s5531_s27 + $0x6c0] ss:$16 sps:$4 sm:$0xff]  }
 0x182   : > { %1501 = vmatpush1.bf16.msra.mxu0 %v4608_v60  ;;  %1542 = vmatpush1.bf16.msra.mxu1 %v4611_v61  ;;  %v4736_v60 = vld [vmem:[%s5531_s27 + $0x6c4] ss:$16 sps:$4 sm:$0xff]  }
 0x183   : > { %1502 = vmatprep.subr.bf16.mxu0 %v4616_v62  ;;  %1543 = vmatprep.subr.bf16.mxu1 %v4619_v63  ;;  %v4697_v61 = vld [vmem:[%s5531_s27 + $0x444] ss:$16 sps:$4 sm:$0xff]   ;;  %v4695_v62 = vld [vmem:[%s5531_s27 + $0x440] ss:$16 sps:$4 sm:$0xff]  }
 0x184   : > { %v4740_v63 = vld [vmem:[%s5531_s27 + $0x6a0] ss:$16 sps:$4 sm:$0xff]  }
 0x186   : > { %1503 = vmatpush1.bf16.msra.mxu0 %v4614_v0  ;;  %1544 = vmatpush1.bf16.msra.mxu1 %v4617_v1  ;;  %v4742_v0 = vld [vmem:[%s5531_s27 + $0x6a4] ss:$16 sps:$4 sm:$0xff]  }
 0x187   : > { %1504 = vmatprep.subr.bf16.mxu0 %v4622_v2  ;;  %1545 = vmatprep.subr.bf16.mxu1 %v4625_v3  ;;  %v4700_v1 = vld [vmem:[%s5531_s27 + $0x424] ss:$16 sps:$4 sm:$0xff]   ;;  %v4698_v2 = vld [vmem:[%s5531_s27 + $0x420] ss:$16 sps:$4 sm:$0xff]  }
 0x188   : > { %v4746_v3 = vld [vmem:[%s5531_s27 + $0x680] ss:$16 sps:$4 sm:$0xff]  }
 0x18a   : > { %1505 = vmatpush1.bf16.msra.mxu0 %v4620_v4  ;;  %1546 = vmatpush1.bf16.msra.mxu1 %v4623_v5  ;;  %v4748_v4 = vld [vmem:[%s5531_s27 + $0x684] ss:$16 sps:$4 sm:$0xff]  }
 0x18b   : > { %1506 = vmatprep.subr.bf16.mxu0 %v4628_v6  ;;  %1547 = vmatprep.subr.bf16.mxu1 %v4631_v7  ;;  %v4703_v5 = vld [vmem:[%s5531_s27 + $0x404] ss:$16 sps:$4 sm:$0xff]   ;;  %v4701_v6 = vld [vmem:[%s5531_s27 + $0x400] ss:$16 sps:$4 sm:$0xff]  }
 0x18c   : > { %v4752_v7 = vld [vmem:[%s5531_s27 + $0x660] ss:$16 sps:$4 sm:$0xff]  }
 0x18e   : > { %1507 = vmatpush1.bf16.msra.mxu0 %v4626_v8  ;;  %1548 = vmatpush1.bf16.msra.mxu1 %v4629_v9  ;;  %v4754_v8 = vld [vmem:[%s5531_s27 + $0x664] ss:$16 sps:$4 sm:$0xff]  }
 0x18f   : > { %1508 = vmatprep.subr.bf16.mxu0 %v4634_v10  ;;  %1549 = vmatprep.subr.bf16.mxu1 %v4637_v11  ;;  %v4706_v9 = vld [vmem:[%s5531_s27 + $0x5e4] ss:$16 sps:$4 sm:$0xff]   ;;  %v4704_v10 = vld [vmem:[%s5531_s27 + $0x5e0] ss:$16 sps:$4 sm:$0xff]  }
 0x190   : > { %v4758_v11 = vld [vmem:[%s5531_s27 + $0x640] ss:$16 sps:$4 sm:$0xff]  }
 0x192   : > { %1509 = vmatpush2.bf16.msra.mxu0 %v4632_v12  ;;  %1550 = vmatpush2.bf16.msra.mxu1 %v4635_v13  ;;  %v4760_v12 = vld [vmem:[%s5531_s27 + $0x644] ss:$16 sps:$4 sm:$0xff]  }
 0x193   : > { %1510 = vmatprep.subr.bf16.mxu0 %v4640_v17  ;;  %1551 = vmatprep.subr.bf16.mxu1 %v4643_v20  ;;  %v4709_v13 = vld [vmem:[%s5531_s27 + $0x5c4] ss:$16 sps:$4 sm:$0xff]   ;;  %v4707_v17 = vld [vmem:[%s5531_s27 + $0x5c0] ss:$16 sps:$4 sm:$0xff]  }
 0x194   : > { %v4764_v20 = vld [vmem:[%s5531_s27 + $0x620] ss:$16 sps:$4 sm:$0xff]  }
 0x196   : > { %1511 = vmatpush2.bf16.msra.mxu0 %v4638_v21  ;;  %1552 = vmatpush2.bf16.msra.mxu1 %v4641_v22  ;;  %v4766_v21 = vld [vmem:[%s5531_s27 + $0x624] ss:$16 sps:$4 sm:$0xff]  }
 0x197   : > { %1512 = vmatprep.subr.bf16.mxu0 %v4646_v23  ;;  %1553 = vmatprep.subr.bf16.mxu1 %v4649_v24  ;;  %v4712_v22 = vld [vmem:[%s5531_s27 + $0x5a4] ss:$16 sps:$4 sm:$0xff]   ;;  %v4710_v23 = vld [vmem:[%s5531_s27 + $0x5a0] ss:$16 sps:$4 sm:$0xff]  }
 0x198   : > { %v4770_v24 = vld [vmem:[%s5531_s27 + $0x600] ss:$16 sps:$4 sm:$0xff]  }
 0x19a   : > { %1513 = vmatpush2.bf16.msra.mxu0 %v4644_v25  ;;  %1554 = vmatpush2.bf16.msra.mxu1 %v4647_v26  ;;  %v4772_v25 = vld [vmem:[%s5531_s27 + $0x604] ss:$16 sps:$4 sm:$0xff]  }
 0x19b   : > { %1514 = vmatprep.subr.bf16.mxu0 %v4652_v27  ;;  %1555 = vmatprep.subr.bf16.mxu1 %v4655_v28  ;;  %v4715_v26 = vld [vmem:[%s5531_s27 + $0x584] ss:$16 sps:$4 sm:$0xff]   ;;  %v4713_v27 = vld [vmem:[%s5531_s27 + $0x580] ss:$16 sps:$4 sm:$0xff]  }
 0x19c   : > { %v4776_v28 = vld [vmem:[%s5531_s27 + $0x7e0] ss:$16 sps:$4 sm:$0xff]  }
 0x19e   : > { %1515 = vmatpush2.bf16.msra.mxu0 %v4650_v29  ;;  %1556 = vmatpush2.bf16.msra.mxu1 %v4653_v30  ;;  %v4778_v29 = vld [vmem:[%s5531_s27 + $0x7e4] ss:$16 sps:$4 sm:$0xff]  }
 0x19f   : > { %1516 = vmatprep.subr.bf16.mxu0 %v4658_v31  ;;  %1557 = vmatprep.subr.bf16.mxu1 %v4661_v32  ;;  %v4718_v30 = vld [vmem:[%s5531_s27 + $0x564] ss:$16 sps:$4 sm:$0xff]   ;;  %v4716_v31 = vld [vmem:[%s5531_s27 + $0x560] ss:$16 sps:$4 sm:$0xff]  }
 0x1a0   : > { %v4782_v32 = vld [vmem:[%s5531_s27 + $0x7c0] ss:$16 sps:$4 sm:$0xff]  }
 0x1a2   : > { %1517 = vmatpush2.bf16.msra.mxu0 %v4656_v33  ;;  %1558 = vmatpush2.bf16.msra.mxu1 %v4659_v34  ;;  %v4784_v33 = vld [vmem:[%s5531_s27 + $0x7c4] ss:$16 sps:$4 sm:$0xff]  }
 0x1a3   : > { %1518 = vmatprep.subr.bf16.mxu0 %v4664_v35  ;;  %1559 = vmatprep.subr.bf16.mxu1 %v4667_v36  ;;  %v4721_v34 = vld [vmem:[%s5531_s27 + $0x544] ss:$16 sps:$4 sm:$0xff]   ;;  %v4719_v35 = vld [vmem:[%s5531_s27 + $0x540] ss:$16 sps:$4 sm:$0xff]  }
 0x1a4   : > { %v4788_v36 = vld [vmem:[%s5531_s27 + $0x7a0] ss:$16 sps:$4 sm:$0xff]  }
 0x1a6   : > { %1519 = vmatpush2.bf16.msra.mxu0 %v4662_v37  ;;  %1560 = vmatpush2.bf16.msra.mxu1 %v4665_v39  ;;  %v4790_v37 = vld [vmem:[%s5531_s27 + $0x7a4] ss:$16 sps:$4 sm:$0xff]  }
 0x1a7   : > { %1520 = vmatprep.subr.bf16.mxu0 %v4670_v40  ;;  %1561 = vmatprep.subr.bf16.mxu1 %v4673_v41  ;;  %v4724_v39 = vld [vmem:[%s5531_s27 + $0x524] ss:$16 sps:$4 sm:$0xff]   ;;  %v4722_v40 = vld [vmem:[%s5531_s27 + $0x520] ss:$16 sps:$4 sm:$0xff]  }
 0x1a8   : > { %v4794_v41 = vld [vmem:[%s5531_s27 + $0x780] ss:$16 sps:$4 sm:$0xff]  }
 0x1aa   : > { %1521 = vmatpush2.bf16.msra.mxu0 %v4668_v42  ;;  %1562 = vmatpush2.bf16.msra.mxu1 %v4671_v43  ;;  %v4796_v42 = vld [vmem:[%s5531_s27 + $0x784] ss:$16 sps:$4 sm:$0xff]  }
 0x1ab   : > { %1522 = vmatprep.subr.bf16.mxu0 %v4676_v44  ;;  %1563 = vmatprep.subr.bf16.mxu1 %v4679_v46  ;;  %v4727_v43 = vld [vmem:[%s5531_s27 + $0x504] ss:$16 sps:$4 sm:$0xff]   ;;  %v4725_v44 = vld [vmem:[%s5531_s27 + $0x500] ss:$16 sps:$4 sm:$0xff]  }
 0x1ac   : > { %v4800_v46 = vld [vmem:[%s5531_s27 + $0x760] ss:$16 sps:$4 sm:$0xff]  }
 0x1ae   : > { %1523 = vmatpush2.bf16.msra.mxu0 %v4674_v47  ;;  %1564 = vmatpush2.bf16.msra.mxu1 %v4677_v48  ;;  %v4802_v47 = vld [vmem:[%s5531_s27 + $0x764] ss:$16 sps:$4 sm:$0xff]   ;;  %v4733_v48 = vld [vmem:[%s5531_s27 + $0x4ec] ss:$16 sps:$4 sm:$0xff]  }
 0x1af   : > { %2374 = vmatprep.subr.bf16.mxu0 %v4682_v49  ;;  %v4806_v49 = vld [vmem:[%s5531_s27 + $0x740] ss:$16 sps:$4 sm:$0xff]  }
 0x1b1   : > { %1525 = vmatmul.mubr.bf16.vlgmr.msra.gmra.mxu0 %v5626_v45  ;;  %1566 = vmatmul.mubr.bf16.vlgmr.msra.gmra.mxu1 %v5622_v38  ;;  %v4730_v45 = vld [vmem:[%s5531_s27 + $0x6e4] ss:$16 sps:$4 sm:$0xff]  }
 0x1b2   : > { %2375 = vmatpush1.bf16.msra.mxu0 %v4680_v50  ;;  %v4694_v38 = vld [vmem:[%s5531_s27 + $0x464] ss:$16 sps:$4 sm:$0xff]   ;;  %2415 = vmatprep.subr.bf16.mxu1 %v4730_v45 }
 0x1b3   : > { %2376 = vmatprep.subr.bf16.mxu0 %v4685_v51  ;;  %2416 = vmatpush1.bf16.msra.mxu1 %v4728_v57  ;;  %v4808_v50 = vld [vmem:[%s5531_s27 + $0x744] ss:$16 sps:$4 sm:$0xff]  }
 0x1b4   : > { %2417 = vmatprep.subr.bf16.mxu1 %v4736_v60  ;;  %v4814_v51 = vld [vmem:[%s5531_s27 + $0x724] ss:$16 sps:$4 sm:$0xff]  }
 0x1b6   : > { %2377 = vmatpush1.bf16.msra.mxu0 %v4683_v52  ;;  %v4812_v52 = vld [vmem:[%s5531_s27 + $0x720] ss:$16 sps:$4 sm:$0xff]  }
 0x1b7   : > { %2378 = vmatprep.subr.bf16.mxu0 %v4688_v53  ;;  %2418 = vmatpush1.bf16.msra.mxu1 %v4734_v59  ;;  %v4820_v53 = vld [vmem:[%s5531_s27 + $0x704] ss:$16 sps:$4 sm:$0xff]  }
 0x1b8   : > { %2419 = vmatprep.subr.bf16.mxu1 %v4742_v0 }
 0x1ba   : > { %2379 = vmatpush1.bf16.msra.mxu0 %v4686_v54  ;;  %v4818_v54 = vld [vmem:[%s5531_s27 + $0x700] ss:$16 sps:$4 sm:$0xff]  }
 0x1bb   : > { %2380 = vmatprep.subr.bf16.mxu0 %v4691_v55  ;;  %2420 = vmatpush1.bf16.msra.mxu1 %v4740_v63  ;;  %v4826_v55 = vld [vmem:[%s5531_s27 + $0x6ec] ss:$16 sps:$4 sm:$0xff]  }
 0x1bc   : > { %2421 = vmatprep.subr.bf16.mxu1 %v4748_v4 }
 0x1be   : > { %2381 = vmatpush1.bf16.msra.mxu0 %v4689_v56  ;;  %v5762_v56 = vld [vmem:[%s5759_s10] sm:$0xf] }
 0x1bf   : > { %2382 = vmatprep.subr.bf16.mxu0 %v4694_v38  ;;  %2422 = vmatpush1.bf16.msra.mxu1 %v4746_v3  ;;  %v753_v57 = vrot.slane %v5762_v56, %v5606_v15  ;;  %v757_v45 = vrot.slane %v5762_v56, %v5613_v18 }
 0x1c0   : > { %2423 = vmatprep.subr.bf16.mxu1 %v4754_v8  ;;  %v4731_v8 = vld [vmem:[%s5531_s27 + $0x4e8] ss:$16 sps:$4 sm:$0xff]  }
 0x1c2   : > { %2383 = vmatpush1.bf16.msra.mxu0 %v4692_v58 }
 0x1c3   : > { %2384 = vmatprep.subr.bf16.mxu0 %v4697_v61  ;;  %2424 = vmatpush1.bf16.msra.mxu1 %v4752_v7 }
 0x1c4   : > { %2425 = vmatprep.subr.bf16.mxu1 %v4760_v12  ;;  %v4745_v12 = vld [vmem:[%s5531_s27 + $0x4ac] ss:$16 sps:$4 sm:$0xff]  }
 0x1c6   : > { %2385 = vmatpush1.bf16.msra.mxu0 %v4695_v62 }
 0x1c7   : > { %2386 = vmatprep.subr.bf16.mxu0 %v4700_v1  ;;  %2426 = vmatpush1.bf16.msra.mxu1 %v4758_v11  ;;  %v4737_v11 = vld [vmem:[%s5531_s27 + $0x4c8] ss:$16 sps:$4 sm:$0xff]  }
 0x1c8   : > { %2427 = vmatprep.subr.bf16.mxu1 %v4766_v21  ;;  %v4757_v21 = vld [vmem:[%s5531_s27 + $0x46c] ss:$16 sps:$4 sm:$0xff]  }
 0x1ca   : > { %2387 = vmatpush1.bf16.msra.mxu0 %v4698_v2 }
 0x1cb   : > { %2388 = vmatprep.subr.bf16.mxu0 %v4703_v5  ;;  %2428 = vmatpush1.bf16.msra.mxu1 %v4764_v20  ;;  %v4749_v20 = vld [vmem:[%s5531_s27 + $0x488] ss:$16 sps:$4 sm:$0xff]  }
 0x1cc   : > { %2429 = vmatprep.subr.bf16.mxu1 %v4772_v25  ;;  %v4769_v25 = vld [vmem:[%s5531_s27 + $0x42c] ss:$16 sps:$4 sm:$0xff]  }
 0x1ce   : > { %2389 = vmatpush1.bf16.msra.mxu0 %v4701_v6 }
 0x1cf   : > { %2390 = vmatprep.subr.bf16.mxu0 %v4706_v9  ;;  %2430 = vmatpush1.bf16.msra.mxu1 %v4770_v24  ;;  %v4761_v24 = vld [vmem:[%s5531_s27 + $0x448] ss:$16 sps:$4 sm:$0xff]  }
 0x1d0   : > { %2431 = vmatprep.subr.bf16.mxu1 %v4778_v29  ;;  %v4781_v29 = vld [vmem:[%s5531_s27 + $0x5ec] ss:$16 sps:$4 sm:$0xff]  }
 0x1d2   : > { %2391 = vmatpush2.bf16.msra.mxu0 %v4704_v10  ;;  %v4739_v10 = vld [vmem:[%s5531_s27 + $0x4cc] ss:$16 sps:$4 sm:$0xff]  }
 0x1d3   : > { %2392 = vmatprep.subr.bf16.mxu0 %v4709_v13  ;;  %2432 = vmatpush2.bf16.msra.mxu1 %v4776_v28  ;;  %v4743_v13 = vld [vmem:[%s5531_s27 + $0x4a8] ss:$16 sps:$4 sm:$0xff]  }
 0x1d4   : > { %2433 = vmatprep.subr.bf16.mxu1 %v4784_v33  ;;  %v4773_v28 = vld [vmem:[%s5531_s27 + $0x408] ss:$16 sps:$4 sm:$0xff]   ;;  %v4793_v33 = vld [vmem:[%s5531_s27 + $0x5ac] ss:$16 sps:$4 sm:$0xff]  }
 0x1d6   : > { %2393 = vmatpush2.bf16.msra.mxu0 %v4707_v17  ;;  %v4751_v17 = vld [vmem:[%s5531_s27 + $0x48c] ss:$16 sps:$4 sm:$0xff]  }
 0x1d7   : > { %2394 = vmatprep.subr.bf16.mxu0 %v4712_v22  ;;  %2434 = vmatpush2.bf16.msra.mxu1 %v4782_v32  ;;  %v4755_v22 = vld [vmem:[%s5531_s27 + $0x468] ss:$16 sps:$4 sm:$0xff]  }
 0x1d8   : > { %2435 = vmatprep.subr.bf16.mxu1 %v4790_v37  ;;  %v4785_v32 = vld [vmem:[%s5531_s27 + $0x5c8] ss:$16 sps:$4 sm:$0xff]   ;;  %v4805_v37 = vld [vmem:[%s5531_s27 + $0x56c] ss:$16 sps:$4 sm:$0xff]  }
 0x1da   : > { %2395 = vmatpush2.bf16.msra.mxu0 %v4710_v23  ;;  %v4763_v23 = vld [vmem:[%s5531_s27 + $0x44c] ss:$16 sps:$4 sm:$0xff]  }
 0x1db   : > { %2396 = vmatprep.subr.bf16.mxu0 %v4715_v26  ;;  %2436 = vmatpush2.bf16.msra.mxu1 %v4788_v36  ;;  %v4767_v26 = vld [vmem:[%s5531_s27 + $0x428] ss:$16 sps:$4 sm:$0xff]  }
 0x1dc   : > { %2437 = vmatprep.subr.bf16.mxu1 %v4796_v42  ;;  %v4797_v36 = vld [vmem:[%s5531_s27 + $0x588] ss:$16 sps:$4 sm:$0xff]  }
 0x1dd   : > { %v4809_v42 = vld [vmem:[%s5531_s27 + $0x548] ss:$16 sps:$4 sm:$0xff]  }
 0x1de   : > { %2397 = vmatpush2.bf16.msra.mxu0 %v4713_v27  ;;  %v4775_v27 = vld [vmem:[%s5531_s27 + $0x40c] ss:$16 sps:$4 sm:$0xff]  }
 0x1df   : > { %2398 = vmatprep.subr.bf16.mxu0 %v4718_v30  ;;  %2438 = vmatpush2.bf16.msra.mxu1 %v4794_v41  ;;  %v4779_v30 = vld [vmem:[%s5531_s27 + $0x5e8] ss:$16 sps:$4 sm:$0xff]   ;;  %v761_v41 = vrot.slane %v5762_v56, %v5609_v16 }
 0x1e0   : > { %2439 = vmatprep.subr.bf16.mxu1 %v4802_v47 }
 0x1e2   : > { %2399 = vmatpush2.bf16.msra.mxu0 %v4716_v31  ;;  %v4787_v31 = vld [vmem:[%s5531_s27 + $0x5cc] ss:$16 sps:$4 sm:$0xff]  }
 0x1e3   : > { %2400 = vmatprep.subr.bf16.mxu0 %v4721_v34  ;;  %2440 = vmatpush2.bf16.msra.mxu1 %v4800_v46  ;;  %v4791_v34 = vld [vmem:[%s5531_s27 + $0x5a8] ss:$16 sps:$4 sm:$0xff]  }
 0x1e4   : > { %2441 = vmatprep.subr.bf16.mxu1 %v4808_v50 }
 0x1e6   : > { %2401 = vmatpush2.bf16.msra.mxu0 %v4719_v35  ;;  %v4799_v35 = vld [vmem:[%s5531_s27 + $0x58c] ss:$16 sps:$4 sm:$0xff]  }
 0x1e7   : > { %2402 = vmatprep.subr.bf16.mxu0 %v4724_v39  ;;  %2442 = vmatpush2.bf16.msra.mxu1 %v4806_v49  ;;  %v4803_v39 = vld [vmem:[%s5531_s27 + $0x568] ss:$16 sps:$4 sm:$0xff]  }
 0x1e8   : > { %2443 = vmatprep.subr.bf16.mxu1 %v4814_v51  ;;  %v4815_v49 = vld [vmem:[%s5531_s27 + $0x528] ss:$16 sps:$4 sm:$0xff]  }
 0x1ea   : > { %2403 = vmatpush2.bf16.msra.mxu0 %v4722_v40  ;;  %v4811_v40 = vld [vmem:[%s5531_s27 + $0x54c] ss:$16 sps:$4 sm:$0xff]  }
 0x1eb   : > { %2404 = vmatprep.subr.bf16.mxu0 %v4727_v43  ;;  %2444 = vmatpush2.bf16.msra.mxu1 %v4812_v52  ;;  %v4817_v43 = vld [vmem:[%s5531_s27 + $0x52c] ss:$16 sps:$4 sm:$0xff]  }
 0x1ec   : > { %2445 = vmatprep.subr.bf16.mxu1 %v4820_v53  ;;  %v4823_v52 = vld [vmem:[%s5531_s27 + $0x50c] ss:$16 sps:$4 sm:$0xff]  }
 0x1ee   : > { %2405 = vmatpush2.bf16.msra.mxu0 %v4725_v44  ;;  %v765_v44 = vrot.slane %v5762_v56, %v5616_v19 }
 0x1ef   : > { %2456 = vmatprep.subr.bf16.mxu0 %v4733_v48  ;;  %2446 = vmatpush2.bf16.msra.mxu1 %v4818_v54 }
 0x1f0   : > { %2497 = vmatprep.subr.bf16.mxu1 %v4826_v55 }
 0x231   : > { %v1444_v38 = vpop.f32.mrf.mxu0  ;;  %v1485_v58 = vpop.f32.mrf.mxu1 }
 0x232   : > { %v1445_v59 = vadd.f32 %v1444_v38, %v753_v57  ;;  %v4821_v38 = vld [vmem:[%s5531_s27 + $0x508] ss:$16 sps:$4 sm:$0xff]  }
 0x233   : > { %v1446_v60 = vpop.f32.mrf.mxu0  ;;  %v1487_v61 = vpop.f32.mrf.mxu1 }
 0x234   : > { %v1486_v62 = vadd.f32 %v1485_v58, %v1445_v59  ;;  %v1447_v63 = vadd.f32 %v1446_v60, %v757_v45 }
 0x235   : > { %v1448_v0 = vpop.f32.mrf.mxu0  ;;  %v1489_v1 = vpop.f32.mrf.mxu1 }
 0x236   : > { %v1488_v2 = vadd.f32 %v1487_v61, %v1447_v63  ;;  %v1574_v3 = vmax.f32 %v1486_v62, 0.0  ;;  %v4824_v62 = vld [vmem:[%s5531_s27 + $0x6e8] ss:$16 sps:$4 sm:$0xff]   ;;  %v4829_v0 = vld [vmem:[%s5531_s27 + $0x6cc] ss:$16 sps:$4 sm:$0xff]  }
 0x237   : > { %v1449_v4 = vpop.f32.mrf.mxu0  ;;  %v1490_v5 = vpop.f32.mrf.mxu1  ;;  %v4827_v1 = vld [vmem:[%s5531_s27 + $0x6c8] ss:$16 sps:$4 sm:$0xff]  }
 0x238   : > { %v1575_v6 = vmax.f32 %v1488_v2, 0.0  ;;  %v5769_v9 = vpack.c.bf16 %v1574_v3, %v1574_v3  ;;  %v4832_v2 = vld [vmem:[%s5531_s27 + $0x6ac] ss:$16 sps:$4 sm:$0xff]   ;;  %v4830_v3 = vld [vmem:[%s5531_s27 + $0x6a8] ss:$16 sps:$4 sm:$0xff]  }
 0x239   : > { %v4835_v4 = vld [vmem:[%s5531_s27 + $0x68c] ss:$16 sps:$4 sm:$0xff]   ;;  %v4872_v5 = vld [vmem:[%s5531_s27 + $0x8e0] ss:$16 sps:$4 sm:$0xff]  }
 0x23a   : > { %v1579_v7 = vpack.c.bf16 %v1575_v6, %v1575_v6  ;;  %v4874_v6 = vld [vmem:[%s5531_s27 + $0x8e4] ss:$16 sps:$4 sm:$0xff]  }
 0x23c   : > { %2406 = vmatprep.mubr.bf16.mxu0 %v1579_v7 }
 0x23d   : > { %2407 = vmatmul.mubr.bf16.vlgmr.msra.gmra.mxu0 %v5769_v9 }
 0x23e   : > { %2457 = vmatpush1.bf16.msra.mxu0 %v4731_v8  ;;  %2488 = vmatprep.mubr.bf16.mxu0 %v1579_v7  ;;  %v4877_v7 = vld [vmem:[%s5531_s27 + $0x8c4] ss:$16 sps:$4 sm:$0xff]   ;;  %v4833_v8 = vld [vmem:[%s5531_s27 + $0x688] ss:$16 sps:$4 sm:$0xff]  }
 0x23f   : > { %2458 = vmatprep.subr.bf16.mxu0 %v4739_v10  ;;  %v4838_v10 = vld [vmem:[%s5531_s27 + $0x66c] ss:$16 sps:$4 sm:$0xff]  }
 0x242   : > { %2459 = vmatpush1.bf16.msra.mxu0 %v4737_v11  ;;  %v4880_v11 = vld [vmem:[%s5531_s27 + $0x8a4] ss:$16 sps:$4 sm:$0xff]  }
 0x243   : > { %2460 = vmatprep.subr.bf16.mxu0 %v4745_v12  ;;  %v4836_v12 = vld [vmem:[%s5531_s27 + $0x668] ss:$16 sps:$4 sm:$0xff]  }
 0x246   : > { %2461 = vmatpush1.bf16.msra.mxu0 %v4743_v13  ;;  %v4878_v13 = vld [vmem:[%s5531_s27 + $0x8a0] ss:$16 sps:$4 sm:$0xff]  }
 0x247   : > { %2462 = vmatprep.subr.bf16.mxu0 %v4751_v17  ;;  %v4841_v17 = vld [vmem:[%s5531_s27 + $0x64c] ss:$16 sps:$4 sm:$0xff]  }
 0x24a   : > { %2463 = vmatpush1.bf16.msra.mxu0 %v4749_v20  ;;  %v4883_v20 = vld [vmem:[%s5531_s27 + $0x884] ss:$16 sps:$4 sm:$0xff]  }
 0x24b   : > { %2464 = vmatprep.subr.bf16.mxu0 %v4757_v21  ;;  %v4839_v21 = vld [vmem:[%s5531_s27 + $0x648] ss:$16 sps:$4 sm:$0xff]  }
 0x24e   : > { %2465 = vmatpush1.bf16.msra.mxu0 %v4755_v22  ;;  %v4881_v22 = vld [vmem:[%s5531_s27 + $0x880] ss:$16 sps:$4 sm:$0xff]  }
 0x24f   : > { %2466 = vmatprep.subr.bf16.mxu0 %v4763_v23  ;;  %v4844_v23 = vld [vmem:[%s5531_s27 + $0x62c] ss:$16 sps:$4 sm:$0xff]  }
 0x252   : > { %2467 = vmatpush1.bf16.msra.mxu0 %v4761_v24  ;;  %v4886_v24 = vld [vmem:[%s5531_s27 + $0x864] ss:$16 sps:$4 sm:$0xff]  }
 0x253   : > { %2468 = vmatprep.subr.bf16.mxu0 %v4769_v25  ;;  %v4842_v25 = vld [vmem:[%s5531_s27 + $0x628] ss:$16 sps:$4 sm:$0xff]  }
 0x256   : > { %2469 = vmatpush1.bf16.msra.mxu0 %v4767_v26  ;;  %v4884_v26 = vld [vmem:[%s5531_s27 + $0x860] ss:$16 sps:$4 sm:$0xff]  }
 0x257   : > { %2470 = vmatprep.subr.bf16.mxu0 %v4775_v27  ;;  %v4847_v27 = vld [vmem:[%s5531_s27 + $0x60c] ss:$16 sps:$4 sm:$0xff]  }
 0x25a   : > { %2471 = vmatpush1.bf16.msra.mxu0 %v4773_v28  ;;  %v4889_v28 = vld [vmem:[%s5531_s27 + $0x844] ss:$16 sps:$4 sm:$0xff]  }
 0x25b   : > { %2472 = vmatprep.subr.bf16.mxu0 %v4781_v29  ;;  %v4845_v29 = vld [vmem:[%s5531_s27 + $0x608] ss:$16 sps:$4 sm:$0xff]  }
 0x25e   : > { %2473 = vmatpush2.bf16.msra.mxu0 %v4779_v30  ;;  %v4887_v30 = vld [vmem:[%s5531_s27 + $0x840] ss:$16 sps:$4 sm:$0xff]  }
 0x25f   : > { %2474 = vmatprep.subr.bf16.mxu0 %v4787_v31  ;;  %v4850_v31 = vld [vmem:[%s5531_s27 + $0x7ec] ss:$16 sps:$4 sm:$0xff]  }
 0x262   : > { %2475 = vmatpush2.bf16.msra.mxu0 %v4785_v32  ;;  %v4892_v32 = vld [vmem:[%s5531_s27 + $0x824] ss:$16 sps:$4 sm:$0xff]  }
 0x263   : > { %2476 = vmatprep.subr.bf16.mxu0 %v4793_v33  ;;  %v4848_v33 = vld [vmem:[%s5531_s27 + $0x7e8] ss:$16 sps:$4 sm:$0xff]  }
 0x266   : > { %2477 = vmatpush2.bf16.msra.mxu0 %v4791_v34  ;;  %v4890_v34 = vld [vmem:[%s5531_s27 + $0x820] ss:$16 sps:$4 sm:$0xff]  }
 0x267   : > { %2478 = vmatprep.subr.bf16.mxu0 %v4799_v35  ;;  %v4853_v35 = vld [vmem:[%s5531_s27 + $0x7cc] ss:$16 sps:$4 sm:$0xff]  }
 0x26a   : > { %2479 = vmatpush2.bf16.msra.mxu0 %v4797_v36  ;;  %v4895_v36 = vld [vmem:[%s5531_s27 + $0x804] ss:$16 sps:$4 sm:$0xff]  }
 0x26b   : > { %2480 = vmatprep.subr.bf16.mxu0 %v4805_v37  ;;  %v4851_v37 = vld [vmem:[%s5531_s27 + $0x7c8] ss:$16 sps:$4 sm:$0xff]  }
 0x26e   : > { %2481 = vmatpush2.bf16.msra.mxu0 %v4803_v39  ;;  %v4893_v39 = vld [vmem:[%s5531_s27 + $0x800] ss:$16 sps:$4 sm:$0xff]  }
 0x26f   : > { %2482 = vmatprep.subr.bf16.mxu0 %v4811_v40  ;;  %v4856_v40 = vld [vmem:[%s5531_s27 + $0x7ac] ss:$16 sps:$4 sm:$0xff]  }
 0x271   : > { %v1526_v46 = vpop.f32.mrf.mxu0  ;;  %v1567_v47 = vpop.f32.mrf.mxu1 }
 0x272   : > { %v1527_v48 = vadd.f32 %v1526_v46, %v761_v41  ;;  %2483 = vmatpush2.bf16.msra.mxu0 %v4809_v42  ;;  %v4898_v41 = vld [vmem:[%s5531_s27 + $0x9e4] ss:$16 sps:$4 sm:$0xff]   ;;  %v4854_v42 = vld [vmem:[%s5531_s27 + $0x7a8] ss:$16 sps:$4 sm:$0xff]  }
 0x273   : > { %v1528_v50 = vpop.f32.mrf.mxu0  ;;  %v1569_v51 = vpop.f32.mrf.mxu1  ;;  %2484 = vmatprep.subr.bf16.mxu0 %v4817_v43  ;;  %v4896_v43 = vld [vmem:[%s5531_s27 + $0x9e0] ss:$16 sps:$4 sm:$0xff]   ;;  %v4901_v46 = vld [vmem:[%s5531_s27 + $0x9c4] ss:$16 sps:$4 sm:$0xff]  }
 0x274   : > { %v1568_v53 = vadd.f32 %v1567_v47, %v1527_v48  ;;  %v1529_v54 = vadd.f32 %v1528_v50, %v765_v44  ;;  %v4859_v44 = vld [vmem:[%s5531_s27 + $0x78c] ss:$16 sps:$4 sm:$0xff]   ;;  %v4857_v47 = vld [vmem:[%s5531_s27 + $0x788] ss:$16 sps:$4 sm:$0xff]   ;;  %v4899_v48 = vld [vmem:[%s5531_s27 + $0x9c0] ss:$16 sps:$4 sm:$0xff]  }
 0x275   : > { %v1530_v55 = vpop.f32.mrf.mxu0  ;;  %v1571_v57 = vpop.f32.mrf.mxu1  ;;  %v4904_v50 = vld [vmem:[%s5531_s27 + $0x9a4] ss:$16 sps:$4 sm:$0xff]  }
 0x276   : > { %v1570_v45 = vadd.f32 %v1569_v51, %v1529_v54  ;;  %2485 = vmatpush2.bf16.msra.mxu0 %v4815_v49  ;;  %v1576_v56 = vmax.f32 %v1568_v53, 0.0  ;;  %v4862_v49 = vld [vmem:[%s5531_s27 + $0x76c] ss:$16 sps:$4 sm:$0xff]   ;;  %v4860_v51 = vld [vmem:[%s5531_s27 + $0x768] ss:$16 sps:$4 sm:$0xff]  }
 0x277   : > { %v1531_v58 = vpop.f32.mrf.mxu0  ;;  %v1572_v59 = vpop.f32.mrf.mxu1  ;;  %2486 = vmatprep.subr.bf16.mxu0 %v4823_v52  ;;  %v4902_v52 = vld [vmem:[%s5531_s27 + $0x9a0] ss:$16 sps:$4 sm:$0xff]   ;;  %v4865_v53 = vld [vmem:[%s5531_s27 + $0x74c] ss:$16 sps:$4 sm:$0xff]   ;;  %v4907_v54 = vld [vmem:[%s5531_s27 + $0x984] ss:$16 sps:$4 sm:$0xff]  }
 0x278   : > { %v1577_v60 = vmax.f32 %v1570_v45, 0.0  ;;  %v5807_v63 = vpack.c.bf16 %v1576_v56, %v1576_v56  ;;  %v4863_v55 = vld [vmem:[%s5531_s27 + $0x748] ss:$16 sps:$4 sm:$0xff]   ;;  %v4905_v57 = vld [vmem:[%s5531_s27 + $0x980] ss:$16 sps:$4 sm:$0xff]  }
 0x279   : > { %v4868_v45 = vld [vmem:[%s5531_s27 + $0x72c] ss:$16 sps:$4 sm:$0xff]   ;;  %v4866_v56 = vld [vmem:[%s5531_s27 + $0x728] ss:$16 sps:$4 sm:$0xff]   ;;  %v4908_v58 = vld [vmem:[%s5531_s27 + $0x960] ss:$16 sps:$4 sm:$0xff]  }
 0x27a   : > { %v1581_v61 = vpack.c.bf16 %v1577_v60, %v1577_v60  ;;  %2487 = vmatpush2.bf16.msra.mxu0 %v4821_v38  ;;  %v4910_v38 = vld [vmem:[%s5531_s27 + $0x964] ss:$16 sps:$4 sm:$0xff]   ;;  %v4871_v59 = vld [vmem:[%s5531_s27 + $0x70c] ss:$16 sps:$4 sm:$0xff]  }
 0x27b   : > { %3338 = vmatprep.subr.bf16.mxu0 %v4874_v6  ;;  %v4913_v60 = vld [vmem:[%s5531_s27 + $0x944] ss:$16 sps:$4 sm:$0xff]   ;;  %v4925_v6 = vld [vmem:[%s5531_s27 + $0x8ec] ss:$16 sps:$4 sm:$0xff]  }
 0x27c   : > { %2447 = vmatprep.mubr.bf16.mxu1 %v1581_v61 }
 0x27d   : > { %2448 = vmatmul.mubr.bf16.vlgmr.msra.gmra.mxu1 %v5807_v63  ;;  %2489 = vmatmul.mubr.bf16.vlgmr.msra.gmra.mxu0 %v5769_v9  ;;  %v4875_v9 = vld [vmem:[%s5531_s27 + $0x8c0] ss:$16 sps:$4 sm:$0xff]  }
 0x27e   : > { %2498 = vmatpush1.bf16.msra.mxu1 %v4824_v62  ;;  %2529 = vmatprep.mubr.bf16.mxu1 %v1581_v61  ;;  %v4869_v61 = vld [vmem:[%s5531_s27 + $0x708] ss:$16 sps:$4 sm:$0xff]   ;;  %v4911_v62 = vld [vmem:[%s5531_s27 + $0x940] ss:$16 sps:$4 sm:$0xff]  }
 0x27f   : > { %2499 = vmatprep.subr.bf16.mxu1 %v4829_v0  ;;  %3339 = vmatpush1.bf16.msra.mxu0 %v4872_v5  ;;  %v4916_v0 = vld [vmem:[%s5531_s27 + $0x924] ss:$16 sps:$4 sm:$0xff]  }
 0x280   : > { %3340 = vmatprep.subr.bf16.mxu0 %v4877_v7  ;;  %v4922_v5 = vld [vmem:[%s5531_s27 + $0xae4] ss:$16 sps:$4 sm:$0xff]  }
 0x281   : > { %v4928_v7 = vld [vmem:[%s5531_s27 + $0xac4] ss:$16 sps:$4 sm:$0xff]  }
 0x282   : > { %2500 = vmatpush1.bf16.msra.mxu1 %v4827_v1  ;;  %v4914_v1 = vld [vmem:[%s5531_s27 + $0x920] ss:$16 sps:$4 sm:$0xff]  }
 0x283   : > { %2501 = vmatprep.subr.bf16.mxu1 %v4832_v2  ;;  %3341 = vmatpush1.bf16.msra.mxu0 %v4875_v9  ;;  %v4919_v2 = vld [vmem:[%s5531_s27 + $0x904] ss:$16 sps:$4 sm:$0xff]  }
 0x284   : > { %3342 = vmatprep.subr.bf16.mxu0 %v4880_v11  ;;  %v4934_v9 = vld [vmem:[%s5531_s27 + $0xaa4] ss:$16 sps:$4 sm:$0xff]  }
 0x285   : > { %v4940_v11 = vld [vmem:[%s5531_s27 + $0xa84] ss:$16 sps:$4 sm:$0xff]  }
 0x286   : > { %2502 = vmatpush1.bf16.msra.mxu1 %v4830_v3  ;;  %v4917_v3 = vld [vmem:[%s5531_s27 + $0x900] ss:$16 sps:$4 sm:$0xff]  }
 0x287   : > { %2503 = vmatprep.subr.bf16.mxu1 %v4835_v4  ;;  %3343 = vmatpush1.bf16.msra.mxu0 %v4878_v13  ;;  %v4920_v4 = vld [vmem:[%s5531_s27 + $0xae0] ss:$16 sps:$4 sm:$0xff]   ;;  %v4946_v13 = vld [vmem:[%s5531_s27 + $0xa64] ss:$16 sps:$4 sm:$0xff]  }
 0x288   : > { %3344 = vmatprep.subr.bf16.mxu0 %v4883_v20  ;;  %v4952_v20 = vld [vmem:[%s5531_s27 + $0xa44] ss:$16 sps:$4 sm:$0xff]  }
 0x28a   : > { %2504 = vmatpush1.bf16.msra.mxu1 %v4833_v8  ;;  %v4932_v8 = vld [vmem:[%s5531_s27 + $0xaa0] ss:$16 sps:$4 sm:$0xff]  }
 0x28b   : > { %2505 = vmatprep.subr.bf16.mxu1 %v4838_v10  ;;  %3345 = vmatpush1.bf16.msra.mxu0 %v4881_v22  ;;  %v4938_v10 = vld [vmem:[%s5531_s27 + $0xa80] ss:$16 sps:$4 sm:$0xff]   ;;  %v4958_v22 = vld [vmem:[%s5531_s27 + $0xa24] ss:$16 sps:$4 sm:$0xff]  }
 0x28c   : > { %3346 = vmatprep.subr.bf16.mxu0 %v4886_v24  ;;  %v4964_v24 = vld [vmem:[%s5531_s27 + $0xa04] ss:$16 sps:$4 sm:$0xff]  }
 0x28e   : > { %2506 = vmatpush1.bf16.msra.mxu1 %v4836_v12  ;;  %v4944_v12 = vld [vmem:[%s5531_s27 + $0xa60] ss:$16 sps:$4 sm:$0xff]  }
 0x28f   : > { %2507 = vmatprep.subr.bf16.mxu1 %v4841_v17  ;;  %3347 = vmatpush1.bf16.msra.mxu0 %v4884_v26  ;;  %v4950_v17 = vld [vmem:[%s5531_s27 + $0xa40] ss:$16 sps:$4 sm:$0xff]   ;;  %v4970_v26 = vld [vmem:[%s5531_s27 + $0xbe4] ss:$16 sps:$4 sm:$0xff]  }
 0x290   : > { %3348 = vmatprep.subr.bf16.mxu0 %v4889_v28  ;;  %v4976_v28 = vld [vmem:[%s5531_s27 + $0xbc4] ss:$16 sps:$4 sm:$0xff]  }
 0x292   : > { %2508 = vmatpush1.bf16.msra.mxu1 %v4839_v21  ;;  %v4956_v21 = vld [vmem:[%s5531_s27 + $0xa20] ss:$16 sps:$4 sm:$0xff]  }
 0x293   : > { %2509 = vmatprep.subr.bf16.mxu1 %v4844_v23  ;;  %3349 = vmatpush1.bf16.msra.mxu0 %v4887_v30  ;;  %v4962_v23 = vld [vmem:[%s5531_s27 + $0xa00] ss:$16 sps:$4 sm:$0xff]   ;;  %v4982_v30 = vld [vmem:[%s5531_s27 + $0xba4] ss:$16 sps:$4 sm:$0xff]  }
 0x294   : > { %3350 = vmatprep.subr.bf16.mxu0 %v4892_v32  ;;  %v4988_v32 = vld [vmem:[%s5531_s27 + $0xb84] ss:$16 sps:$4 sm:$0xff]  }
 0x296   : > { %2510 = vmatpush1.bf16.msra.mxu1 %v4842_v25  ;;  %v4968_v25 = vld [vmem:[%s5531_s27 + $0xbe0] ss:$16 sps:$4 sm:$0xff]  }
 0x297   : > { %2511 = vmatprep.subr.bf16.mxu1 %v4847_v27  ;;  %3351 = vmatpush1.bf16.msra.mxu0 %v4890_v34  ;;  %v4974_v27 = vld [vmem:[%s5531_s27 + $0xbc0] ss:$16 sps:$4 sm:$0xff]   ;;  %v4994_v34 = vld [vmem:[%s5531_s27 + $0xb64] ss:$16 sps:$4 sm:$0xff]  }
 0x298   : > { %3352 = vmatprep.subr.bf16.mxu0 %v4895_v36  ;;  %v5000_v36 = vld [vmem:[%s5531_s27 + $0xb44] ss:$16 sps:$4 sm:$0xff]  }
 0x29a   : > { %2512 = vmatpush1.bf16.msra.mxu1 %v4845_v29  ;;  %v4980_v29 = vld [vmem:[%s5531_s27 + $0xba0] ss:$16 sps:$4 sm:$0xff]  }
 0x29b   : > { %2513 = vmatprep.subr.bf16.mxu1 %v4850_v31  ;;  %3353 = vmatpush1.bf16.msra.mxu0 %v4893_v39  ;;  %v4986_v31 = vld [vmem:[%s5531_s27 + $0xb80] ss:$16 sps:$4 sm:$0xff]  }
 0x29c   : > { %3354 = vmatprep.subr.bf16.mxu0 %v4898_v41 }
 0x29e   : > { %2514 = vmatpush2.bf16.msra.mxu1 %v4848_v33  ;;  %v4992_v33 = vld [vmem:[%s5531_s27 + $0xb60] ss:$16 sps:$4 sm:$0xff]  }
 0x29f   : > { %2515 = vmatprep.subr.bf16.mxu1 %v4853_v35  ;;  %3355 = vmatpush2.bf16.msra.mxu0 %v4896_v43  ;;  %v4998_v35 = vld [vmem:[%s5531_s27 + $0xb40] ss:$16 sps:$4 sm:$0xff]  }
 0x2a0   : > { %3356 = vmatprep.subr.bf16.mxu0 %v4901_v46 }
 0x2a2   : > { %2516 = vmatpush2.bf16.msra.mxu1 %v4851_v37  ;;  %v5006_v37 = vld [vmem:[%s5531_s27 + $0xb24] ss:$16 sps:$4 sm:$0xff]  }
 0x2a3   : > { %2517 = vmatprep.subr.bf16.mxu1 %v4856_v40  ;;  %3357 = vmatpush2.bf16.msra.mxu0 %v4899_v48  ;;  %v5004_v40 = vld [vmem:[%s5531_s27 + $0xb20] ss:$16 sps:$4 sm:$0xff]  }
 0x2a4   : > { %3358 = vmatprep.subr.bf16.mxu0 %v4904_v50  ;;  %v5909_v48 = vld [vmem:[%s5759_s10 + $0x4] sm:$0xf] }
 0x2a5   : > { %v1721_v50 = vrot.slane %v5909_v48, %v5613_v18 }
 0x2a6   : > { %2518 = vmatpush2.bf16.msra.mxu1 %v4854_v42  ;;  %v5012_v42 = vld [vmem:[%s5531_s27 + $0xb04] ss:$16 sps:$4 sm:$0xff]  }
 0x2a7   : > { %2519 = vmatprep.subr.bf16.mxu1 %v4859_v44  ;;  %3359 = vmatpush2.bf16.msra.mxu0 %v4902_v52  ;;  %v5010_v44 = vld [vmem:[%s5531_s27 + $0xb00] ss:$16 sps:$4 sm:$0xff]  }
 0x2a8   : > { %3360 = vmatprep.subr.bf16.mxu0 %v4907_v54 }
 0x2aa   : > { %2520 = vmatpush2.bf16.msra.mxu1 %v4857_v47  ;;  %v5018_v47 = vld [vmem:[%s5531_s27 + $0xaec] ss:$16 sps:$4 sm:$0xff]  }
 0x2ab   : > { %2521 = vmatprep.subr.bf16.mxu1 %v4862_v49  ;;  %3361 = vmatpush2.bf16.msra.mxu0 %v4905_v57  ;;  %v1717_v49 = vrot.slane %v5909_v48, %v5606_v15 }
 0x2ac   : > { %3362 = vmatprep.subr.bf16.mxu0 %v4910_v38 }
 0x2ae   : > { %2522 = vmatpush2.bf16.msra.mxu1 %v4860_v51 }
 0x2af   : > { %2523 = vmatprep.subr.bf16.mxu1 %v4865_v53  ;;  %3363 = vmatpush2.bf16.msra.mxu0 %v4908_v58 }
 0x2b0   : > { %3364 = vmatprep.subr.bf16.mxu0 %v4913_v60 }
 0x2b2   : > { %2524 = vmatpush2.bf16.msra.mxu1 %v4863_v55 }
 0x2b3   : > { %2525 = vmatprep.subr.bf16.mxu1 %v4868_v45  ;;  %3365 = vmatpush2.bf16.msra.mxu0 %v4911_v62 }
 0x2b4   : > { %3366 = vmatprep.subr.bf16.mxu0 %v4916_v0 }
 0x2b6   : > { %2526 = vmatpush2.bf16.msra.mxu1 %v4866_v56 }
 0x2b7   : > { %2527 = vmatprep.subr.bf16.mxu1 %v4871_v59  ;;  %3367 = vmatpush2.bf16.msra.mxu0 %v4914_v1  ;;  %v4923_v1 = vld [vmem:[%s5531_s27 + $0x8e8] ss:$16 sps:$4 sm:$0xff]  }
 0x2b8   : > { %3368 = vmatprep.subr.bf16.mxu0 %v4919_v2 }
 0x2ba   : > { %2528 = vmatpush2.bf16.msra.mxu1 %v4869_v61 }
 0x2bb   : > { %3369 = vmatpush2.bf16.msra.mxu0 %v4917_v3  ;;  %3379 = vmatprep.subr.bf16.mxu1 %v4922_v5  ;;  %v4931_v3 = vld [vmem:[%s5531_s27 + $0x8cc] ss:$16 sps:$4 sm:$0xff]  }
 0x2bc   : > { %3420 = vmatprep.subr.bf16.mxu0 %v4925_v6  ;;  %v4937_v5 = vld [vmem:[%s5531_s27 + $0x8ac] ss:$16 sps:$4 sm:$0xff]   ;;  %v4935_v6 = vld [vmem:[%s5531_s27 + $0x8a8] ss:$16 sps:$4 sm:$0xff]  }
 0x2bd   : > { %2530 = vmatmul.mubr.bf16.vlgmr.msra.gmra.mxu1 %v5807_v63  ;;  %v4926_v63 = vld [vmem:[%s5531_s27 + $0xac0] ss:$16 sps:$4 sm:$0xff]  }
 0x2be   : > { %3380 = vmatpush1.bf16.msra.mxu1 %v4920_v4  ;;  %v4929_v4 = vld [vmem:[%s5531_s27 + $0x8c8] ss:$16 sps:$4 sm:$0xff]  }
 0x2bf   : > { %3381 = vmatprep.subr.bf16.mxu1 %v4928_v7  ;;  %v4941_v7 = vld [vmem:[%s5531_s27 + $0x888] ss:$16 sps:$4 sm:$0xff]  }
 0x2c2   : > { %3382 = vmatpush1.bf16.msra.mxu1 %v4926_v63  ;;  %v4943_v63 = vld [vmem:[%s5531_s27 + $0x88c] ss:$16 sps:$4 sm:$0xff]  }
 0x2c3   : > { %3383 = vmatprep.subr.bf16.mxu1 %v4934_v9  ;;  %v4947_v9 = vld [vmem:[%s5531_s27 + $0x868] ss:$16 sps:$4 sm:$0xff]  }
 0x2c6   : > { %3384 = vmatpush1.bf16.msra.mxu1 %v4932_v8  ;;  %v4949_v8 = vld [vmem:[%s5531_s27 + $0x86c] ss:$16 sps:$4 sm:$0xff]  }
 0x2c7   : > { %3385 = vmatprep.subr.bf16.mxu1 %v4940_v11  ;;  %v4953_v11 = vld [vmem:[%s5531_s27 + $0x848] ss:$16 sps:$4 sm:$0xff]  }
 0x2ca   : > { %3386 = vmatpush1.bf16.msra.mxu1 %v4938_v10  ;;  %v4955_v10 = vld [vmem:[%s5531_s27 + $0x84c] ss:$16 sps:$4 sm:$0xff]  }
 0x2cb   : > { %3387 = vmatprep.subr.bf16.mxu1 %v4946_v13  ;;  %v4959_v13 = vld [vmem:[%s5531_s27 + $0x828] ss:$16 sps:$4 sm:$0xff]  }
 0x2ce   : > { %3388 = vmatpush1.bf16.msra.mxu1 %v4944_v12  ;;  %v4961_v12 = vld [vmem:[%s5531_s27 + $0x82c] ss:$16 sps:$4 sm:$0xff]  }
 0x2cf   : > { %3389 = vmatprep.subr.bf16.mxu1 %v4952_v20  ;;  %v4965_v20 = vld [vmem:[%s5531_s27 + $0x808] ss:$16 sps:$4 sm:$0xff]  }
 0x2d2   : > { %3390 = vmatpush1.bf16.msra.mxu1 %v4950_v17  ;;  %v4967_v17 = vld [vmem:[%s5531_s27 + $0x80c] ss:$16 sps:$4 sm:$0xff]  }
 0x2d3   : > { %3391 = vmatprep.subr.bf16.mxu1 %v4958_v22  ;;  %v4971_v22 = vld [vmem:[%s5531_s27 + $0x9e8] ss:$16 sps:$4 sm:$0xff]  }
 0x2d6   : > { %3392 = vmatpush1.bf16.msra.mxu1 %v4956_v21  ;;  %v4973_v21 = vld [vmem:[%s5531_s27 + $0x9ec] ss:$16 sps:$4 sm:$0xff]  }
 0x2d7   : > { %3393 = vmatprep.subr.bf16.mxu1 %v4964_v24  ;;  %v4977_v24 = vld [vmem:[%s5531_s27 + $0x9c8] ss:$16 sps:$4 sm:$0xff]  }
 0x2da   : > { %3394 = vmatpush1.bf16.msra.mxu1 %v4962_v23  ;;  %v4979_v23 = vld [vmem:[%s5531_s27 + $0x9cc] ss:$16 sps:$4 sm:$0xff]  }
 0x2db   : > { %3395 = vmatprep.subr.bf16.mxu1 %v4970_v26  ;;  %v4983_v26 = vld [vmem:[%s5531_s27 + $0x9a8] ss:$16 sps:$4 sm:$0xff]  }
 0x2de   : > { %3396 = vmatpush2.bf16.msra.mxu1 %v4968_v25  ;;  %v4985_v25 = vld [vmem:[%s5531_s27 + $0x9ac] ss:$16 sps:$4 sm:$0xff]  }
 0x2df   : > { %3397 = vmatprep.subr.bf16.mxu1 %v4976_v28  ;;  %v4989_v28 = vld [vmem:[%s5531_s27 + $0x988] ss:$16 sps:$4 sm:$0xff]  }
 0x2e2   : > { %3398 = vmatpush2.bf16.msra.mxu1 %v4974_v27  ;;  %v4991_v27 = vld [vmem:[%s5531_s27 + $0x98c] ss:$16 sps:$4 sm:$0xff]  }
 0x2e3   : > { %3399 = vmatprep.subr.bf16.mxu1 %v4982_v30  ;;  %v4995_v30 = vld [vmem:[%s5531_s27 + $0x968] ss:$16 sps:$4 sm:$0xff]  }
 0x2e6   : > { %3400 = vmatpush2.bf16.msra.mxu1 %v4980_v29  ;;  %v4997_v29 = vld [vmem:[%s5531_s27 + $0x96c] ss:$16 sps:$4 sm:$0xff]  }
 0x2e7   : > { %3401 = vmatprep.subr.bf16.mxu1 %v4988_v32  ;;  %v1725_v32 = vrot.slane %v5909_v48, %v5609_v16 }
 0x2ea   : > { %3402 = vmatpush2.bf16.msra.mxu1 %v4986_v31  ;;  %v5003_v31 = vld [vmem:[%s5531_s27 + $0x94c] ss:$16 sps:$4 sm:$0xff]  }
 0x2eb   : > { %3403 = vmatprep.subr.bf16.mxu1 %v4994_v34  ;;  %v5009_v34 = vld [vmem:[%s5531_s27 + $0x92c] ss:$16 sps:$4 sm:$0xff]  }
 0x2ee   : > { %3404 = vmatpush2.bf16.msra.mxu1 %v4992_v33  ;;  %v5001_v33 = vld [vmem:[%s5531_s27 + $0x948] ss:$16 sps:$4 sm:$0xff]  }
 0x2ef   : > { %3405 = vmatprep.subr.bf16.mxu1 %v5000_v36 }
 0x2f2   : > { %3406 = vmatpush2.bf16.msra.mxu1 %v4998_v35  ;;  %v1729_v35 = vrot.slane %v5909_v48, %v5616_v19 }
 0x2f3   : > { %3407 = vmatprep.subr.bf16.mxu1 %v5006_v37  ;;  %v5007_v37 = vld [vmem:[%s5531_s27 + $0x928] ss:$16 sps:$4 sm:$0xff]  }
 0x2f6   : > { %3408 = vmatpush2.bf16.msra.mxu1 %v5004_v40  ;;  %v5015_v40 = vld [vmem:[%s5531_s27 + $0x90c] ss:$16 sps:$4 sm:$0xff]  }
 0x2f7   : > { %3409 = vmatprep.subr.bf16.mxu1 %v5012_v42 }
 0x2fa   : > { %3410 = vmatpush2.bf16.msra.mxu1 %v5010_v44 }
 0x2fb   : > { %3461 = vmatprep.subr.bf16.mxu1 %v5018_v47 }
 0x2fd   : > { %v2408_v39 = vpop.f32.mrf.mxu0 }
 0x2fe   : > { %v2409_v51 = vadd.f32 %v2408_v39, %v1717_v49 }
 0x2ff   : > { %v2410_v41 = vpop.f32.mrf.mxu0 }
 0x300   : > { %v2411_v54 = vadd.f32 %v2410_v41, %v1721_v50 }
 0x301   : > { %v2412_v43 = vpop.f32.mrf.mxu0 }
 0x303   : > { %v2413_v46 = vpop.f32.mrf.mxu0 }
 0x304   : > { %v5013_v46 = vld [vmem:[%s5531_s27 + $0x908] ss:$16 sps:$4 sm:$0xff]  }
 0x33d   : > { %v2449_v52 = vpop.f32.mrf.mxu1  ;;  %v5915_v53 = vpop.f32.mrf.mxu0 }
 0x33e   : > { %v2450_v55 = vadd.f32 %v2449_v52, %v2409_v51  ;;  %v2491_v36 = vadd.f32 %v5915_v53, %v1725_v32  ;;  %v5016_v52 = vld [vmem:[%s5531_s27 + $0xae8] ss:$16 sps:$4 sm:$0xff]  }
 0x33f   : > { %v2451_v57 = vpop.f32.mrf.mxu1  ;;  %v5917_v45 = vpop.f32.mrf.mxu0 }
 0x340   : > { %v2452_v38 = vadd.f32 %v2451_v57, %v2411_v54  ;;  %v2538_v56 = vmax.f32 %v2450_v55, 0.0  ;;  %v2493_v41 = vadd.f32 %v5917_v45, %v1729_v35  ;;  %v5021_v54 = vld [vmem:[%s5531_s27 + $0xacc] ss:$16 sps:$4 sm:$0xff]   ;;  %v5019_v55 = vld [vmem:[%s5531_s27 + $0xac8] ss:$16 sps:$4 sm:$0xff]  }
 0x341   : > { %v2453_v58 = vpop.f32.mrf.mxu1  ;;  %v2494_v59 = vpop.f32.mrf.mxu0  ;;  %v5024_v57 = vld [vmem:[%s5531_s27 + $0xaac] ss:$16 sps:$4 sm:$0xff]   ;;  %v5022_v45 = vld [vmem:[%s5531_s27 + $0xaa8] ss:$16 sps:$4 sm:$0xff]  }
 0x342   : > { %v2539_v60 = vmax.f32 %v2452_v38, 0.0  ;;  %v5920_v2 = vpack.c.bf16 %v2538_v56, %v2538_v56  ;;  %v5027_v38 = vld [vmem:[%s5531_s27 + $0xa8c] ss:$16 sps:$4 sm:$0xff]   ;;  %v5025_v56 = vld [vmem:[%s5531_s27 + $0xa88] ss:$16 sps:$4 sm:$0xff]  }
 0x343   : > { %v2454_v61 = vpop.f32.mrf.mxu1  ;;  %v2495_v62 = vpop.f32.mrf.mxu0  ;;  %v5030_v58 = vld [vmem:[%s5531_s27 + $0xa6c] ss:$16 sps:$4 sm:$0xff]   ;;  %v5028_v59 = vld [vmem:[%s5531_s27 + $0xa68] ss:$16 sps:$4 sm:$0xff]  }
 0x344   : > { %v2543_v0 = vpack.c.bf16 %v2539_v60, %v2539_v60  ;;  %v5033_v60 = vld [vmem:[%s5531_s27 + $0xa4c] ss:$16 sps:$4 sm:$0xff]   ;;  %v5031_v61 = vld [vmem:[%s5531_s27 + $0xa48] ss:$16 sps:$4 sm:$0xff]  }
 0x345   : > { %v5036_v62 = vld [vmem:[%s5531_s27 + $0xa2c] ss:$16 sps:$4 sm:$0xff]  }
 0x346   : > { %3370 = vmatprep.mubr.bf16.mxu0 %v2543_v0 }
 0x347   : > { %3371 = vmatmul.mubr.bf16.vlgmr.msra.gmra.mxu0 %v5920_v2 }
 0x348   : > { %3421 = vmatpush1.bf16.msra.mxu0 %v4923_v1  ;;  %3452 = vmatprep.mubr.bf16.mxu0 %v2543_v0  ;;  %v5034_v0 = vld [vmem:[%s5531_s27 + $0xa28] ss:$16 sps:$4 sm:$0xff]   ;;  %v5039_v1 = vld [vmem:[%s5531_s27 + $0xa0c] ss:$16 sps:$4 sm:$0xff]  }
 0x349   : > { %3422 = vmatprep.subr.bf16.mxu0 %v4931_v3  ;;  %v5042_v3 = vld [vmem:[%s5531_s27 + $0xbec] ss:$16 sps:$4 sm:$0xff]  }
 0x34c   : > { %3423 = vmatpush1.bf16.msra.mxu0 %v4929_v4  ;;  %v5040_v4 = vld [vmem:[%s5531_s27 + $0xbe8] ss:$16 sps:$4 sm:$0xff]  }
 0x34d   : > { %3424 = vmatprep.subr.bf16.mxu0 %v4937_v5  ;;  %v5045_v5 = vld [vmem:[%s5531_s27 + $0xbcc] ss:$16 sps:$4 sm:$0xff]  }
 0x350   : > { %3425 = vmatpush1.bf16.msra.mxu0 %v4935_v6  ;;  %v5043_v6 = vld [vmem:[%s5531_s27 + $0xbc8] ss:$16 sps:$4 sm:$0xff]  }
 0x351   : > { %3426 = vmatprep.subr.bf16.mxu0 %v4943_v63  ;;  %v5048_v63 = vld [vmem:[%s5531_s27 + $0xbac] ss:$16 sps:$4 sm:$0xff]  }
 0x354   : > { %3427 = vmatpush1.bf16.msra.mxu0 %v4941_v7  ;;  %v5046_v7 = vld [vmem:[%s5531_s27 + $0xba8] ss:$16 sps:$4 sm:$0xff]  }
 0x355   : > { %3428 = vmatprep.subr.bf16.mxu0 %v4949_v8  ;;  %v5051_v8 = vld [vmem:[%s5531_s27 + $0xb8c] ss:$16 sps:$4 sm:$0xff]  }
 0x358   : > { %3429 = vmatpush1.bf16.msra.mxu0 %v4947_v9  ;;  %v5049_v9 = vld [vmem:[%s5531_s27 + $0xb88] ss:$16 sps:$4 sm:$0xff]  }
 0x359   : > { %3430 = vmatprep.subr.bf16.mxu0 %v4955_v10  ;;  %v5054_v10 = vld [vmem:[%s5531_s27 + $0xb6c] ss:$16 sps:$4 sm:$0xff]  }
 0x35c   : > { %3431 = vmatpush1.bf16.msra.mxu0 %v4953_v11  ;;  %v5052_v11 = vld [vmem:[%s5531_s27 + $0xb68] ss:$16 sps:$4 sm:$0xff]  }
 0x35d   : > { %3432 = vmatprep.subr.bf16.mxu0 %v4961_v12  ;;  %v5057_v12 = vld [vmem:[%s5531_s27 + $0xb4c] ss:$16 sps:$4 sm:$0xff]  }
 0x360   : > { %3433 = vmatpush1.bf16.msra.mxu0 %v4959_v13  ;;  %v5055_v13 = vld [vmem:[%s5531_s27 + $0xb48] ss:$16 sps:$4 sm:$0xff]  }
 0x361   : > { %3434 = vmatprep.subr.bf16.mxu0 %v4967_v17  ;;  %v5060_v17 = vld [vmem:[%s5531_s27 + $0xb2c] ss:$16 sps:$4 sm:$0xff]  }
 0x364   : > { %3435 = vmatpush1.bf16.msra.mxu0 %v4965_v20  ;;  %v5058_v20 = vld [vmem:[%s5531_s27 + $0xb28] ss:$16 sps:$4 sm:$0xff]  }
 0x365   : > { %3436 = vmatprep.subr.bf16.mxu0 %v4973_v21  ;;  %v5063_v21 = vld [vmem:[%s5531_s27 + $0xb0c] ss:$16 sps:$4 sm:$0xff]  }
 0x368   : > { %3437 = vmatpush2.bf16.msra.mxu0 %v4971_v22  ;;  %v5061_v22 = vld [vmem:[%s5531_s27 + $0xb08] ss:$16 sps:$4 sm:$0xff]  }
 0x369   : > { %3438 = vmatprep.subr.bf16.mxu0 %v4979_v23 }
 0x36c   : > { %3439 = vmatpush2.bf16.msra.mxu0 %v4977_v24 }
 0x36d   : > { %3440 = vmatprep.subr.bf16.mxu0 %v4985_v25 }
 0x370   : > { %3441 = vmatpush2.bf16.msra.mxu0 %v4983_v26 }
 0x371   : > { %3442 = vmatprep.subr.bf16.mxu0 %v4991_v27  ;;  %v4266_v27 = vld [vmem:[%s5759_s10 + $0x8] sm:$0xf] }
 0x374   : > { %3443 = vmatpush2.bf16.msra.mxu0 %v4989_v28  ;;  %v3506_v28 = vld [vmem:[%s445_s12] sm:$0xf] }
 0x375   : > { %3444 = vmatprep.subr.bf16.mxu0 %v4997_v29  ;;  %v2681_v29 = vrot.slane %v4266_v27, %v5606_v15 }
 0x378   : > { %3445 = vmatpush2.bf16.msra.mxu0 %v4995_v30  ;;  %v3507_v30 = vunpack.c.l.bf16 %v3506_v28 }
 0x379   : > { %3446 = vmatprep.subr.bf16.mxu0 %v5003_v31  ;;  %v2685_v31 = vrot.slane %v4266_v27, %v5613_v18 }
 0x37c   : > { %3447 = vmatpush2.bf16.msra.mxu0 %v5001_v33  ;;  %v3512_v33 = vrot.slane %v3507_v30, %v5606_v15 }
 0x37d   : > { %v2531_v39 = vpop.f32.mrf.mxu1  ;;  %3448 = vmatprep.subr.bf16.mxu0 %v5009_v34  ;;  %v3516_v34 = vrot.slane %v3507_v30, %v5609_v16 }
 0x37e   : > { %v2532_v42 = vadd.f32 %v2531_v39, %v2491_v36 }
 0x37f   : > { %v2533_v43 = vpop.f32.mrf.mxu1 }
 0x380   : > { %v2534_v44 = vadd.f32 %v2533_v43, %v2493_v41  ;;  %3449 = vmatpush2.bf16.msra.mxu0 %v5007_v37  ;;  %v2540_v47 = vmax.f32 %v2532_v42, 0.0  ;;  %v3532_v43 = vrot.slane %v3512_v33, %v5606_v15 }
 0x381   : > { %v2535_v49 = vpop.f32.mrf.mxu1  ;;  %3450 = vmatprep.subr.bf16.mxu0 %v5015_v40 }
 0x382   : > { %v2541_v48 = vmax.f32 %v2534_v44, 0.0  ;;  %v5960_v53 = vpack.c.bf16 %v2540_v47, %v2540_v47 }
 0x383   : > { %v2536_v50 = vpop.f32.mrf.mxu1 }
 0x384   : > { %v2545_v51 = vpack.c.bf16 %v2541_v48, %v2541_v48  ;;  %3451 = vmatpush2.bf16.msra.mxu0 %v5013_v46  ;;  %v3536_v46 = vrot.slane %v3516_v34, %v5606_v15 }
 0x386   : > { %3411 = vmatprep.mubr.bf16.mxu1 %v2545_v51 }
 0x387   : > { %3412 = vmatmul.mubr.bf16.vlgmr.msra.gmra.mxu1 %v5960_v53  ;;  %3453 = vmatmul.mubr.bf16.vlgmr.msra.gmra.mxu0 %v5920_v2  ;;  %v5037_v2 = vld [vmem:[%s5531_s27 + $0xa08] ss:$16 sps:$4 sm:$0xff]  }
 0x388   : > { %3462 = vmatpush1.bf16.msra.mxu1 %v5016_v52  ;;  %3493 = vmatprep.mubr.bf16.mxu1 %v2545_v51 }
 0x389   : > { %3463 = vmatprep.subr.bf16.mxu1 %v5021_v54  ;;  %v3519_v54 = vsub.s32 4, %v5603_v14 }
 0x38c   : > { %3464 = vmatpush1.bf16.msra.mxu1 %v5019_v55  ;;  %v2689_v55 = vrot.slane %v4266_v27, %v5609_v16 }
 0x38d   : > { %3465 = vmatprep.subr.bf16.mxu1 %v5024_v57  ;;  %v3523_v57 = vsub.s32 6, %v5603_v14 }
 0x390   : > { %3466 = vmatpush1.bf16.msra.mxu1 %v5022_v45  ;;  %v2693_v45 = vrot.slane %v4266_v27, %v5616_v19 }
 0x391   : > { %3467 = vmatprep.subr.bf16.mxu1 %v5027_v38  ;;  %v3520_v38 = vrot.slane %v3507_v30, %v3519_v54 }
 0x394   : > { %3468 = vmatpush1.bf16.msra.mxu1 %v5025_v56 }
 0x395   : > { %3469 = vmatprep.subr.bf16.mxu1 %v5030_v58  ;;  %v3524_v58 = vrot.slane %v3507_v30, %v3523_v57 }
 0x398   : > { %3470 = vmatpush1.bf16.msra.mxu1 %v5028_v59 }
 0x399   : > { %3471 = vmatprep.subr.bf16.mxu1 %v5033_v60 }
 0x39c   : > { %3472 = vmatpush1.bf16.msra.mxu1 %v5031_v61 }
 0x39d   : > { %3473 = vmatprep.subr.bf16.mxu1 %v5036_v62  ;;  %v3540_v62 = vrot.slane %v3520_v38, %v5606_v15 }
 0x3a0   : > { %3474 = vmatpush1.bf16.msra.mxu1 %v5034_v0 }
 0x3a1   : > { %3475 = vmatprep.subr.bf16.mxu1 %v5039_v1 }
 0x3a4   : > { %3476 = vmatpush1.bf16.msra.mxu1 %v5037_v2 }
 0x3a5   : > { %3477 = vmatprep.subr.bf16.mxu1 %v5042_v3  ;;  %v3544_v3 = vrot.slane %v3524_v58, %v5606_v15 }
 0x3a8   : > { %3478 = vmatpush2.bf16.msra.mxu1 %v5040_v4 }
 0x3a9   : > { %3479 = vmatprep.subr.bf16.mxu1 %v5045_v5 }
 0x3ac   : > { %3480 = vmatpush2.bf16.msra.mxu1 %v5043_v6 }
 0x3ad   : > { %3481 = vmatprep.subr.bf16.mxu1 %v5048_v63 }
 0x3b0   : > { %3482 = vmatpush2.bf16.msra.mxu1 %v5046_v7  ;;  %v4395_v7 = vld [vmem:[%s448_s9] ss:$0 sm:$0xff] }
 0x3b1   : > { %3483 = vmatprep.subr.bf16.mxu1 %v5051_v8 }
 0x3b4   : > { %3484 = vmatpush2.bf16.msra.mxu1 %v5049_v9 }
 0x3b5   : > { %3485 = vmatprep.subr.bf16.mxu1 %v5054_v10 }
 0x3b8   : > { %3486 = vmatpush2.bf16.msra.mxu1 %v5052_v11 }
 0x3b9   : > { %3487 = vmatprep.subr.bf16.mxu1 %v5057_v12 }
 0x3bc   : > { %3488 = vmatpush2.bf16.msra.mxu1 %v5055_v13 }
 0x3bd   : > { %3489 = vmatprep.subr.bf16.mxu1 %v5060_v17 }
 0x3c0   : > { %3490 = vmatpush2.bf16.msra.mxu1 %v5058_v20 }
 0x3c1   : > { %3491 = vmatprep.subr.bf16.mxu1 %v5063_v21 }
 0x3c4   : > { %3492 = vmatpush2.bf16.msra.mxu1 %v5061_v22 }
 0x3c7   : > { %3494 = vmatmul.mubr.bf16.vlgmr.msra.gmra.mxu1 %v5960_v53 }
 0x407   : > { %v3372_v23 = vpop.f32.mrf.mxu0 }
 0x408   : > { %v3373_v32 = vadd.f32 %v3372_v23, %v2681_v29 }
 0x409   : > { %v3374_v24 = vpop.f32.mrf.mxu0 }
 0x40a   : > { %v3375_v37 = vadd.f32 %v3374_v24, %v2685_v31 }
 0x40b   : > { %v3376_v25 = vpop.f32.mrf.mxu0 }
 0x40d   : > { %v3377_v26 = vpop.f32.mrf.mxu0 }
 0x447   : > { %v3413_v35 = vpop.f32.mrf.mxu1  ;;  %v3454_v36 = vpop.f32.mrf.mxu0 }
 0x448   : > { %v3414_v39 = vadd.f32 %v3413_v35, %v3373_v32  ;;  %v3455_v56 = vadd.f32 %v3454_v36, %v2689_v55 }
 0x449   : > { %v3415_v40 = vpop.f32.mrf.mxu1  ;;  %v3456_v41 = vpop.f32.mrf.mxu0 }
 0x44a   : > { %v3502_v42 = vmax.f32 %v3414_v39, 0.0  ;;  %v3416_v44 = vadd.f32 %v3415_v40, %v3375_v37  ;;  %v3457_v60 = vadd.f32 %v3456_v41, %v2693_v45 }
 0x44b   : > { %v3417_v47 = vpop.f32.mrf.mxu1  ;;  %v3458_v49 = vpop.f32.mrf.mxu0 }
 0x44c   : > { %v3503_v18 = vmax.f32 %v3416_v44, 0.0  ;;  %v3545_v51 = vmul.f32 %v3532_v43, %v3502_v42 }
 0x44d   : > { %v3418_v48 = vpop.f32.mrf.mxu1  ;;  %v3459_v50 = vpop.f32.mrf.mxu0 }
 0x44e   : > { %v3546_v52 = vmul.f32 %v3536_v46, %v3503_v18 }
 0x450   : > { %v3549_v53 = vadd.f32 %v3546_v52, %v3545_v51 }
 0x487   : > { %v3495_v59 = vpop.f32.mrf.mxu1 }
 0x488   : > { %v3496_v61 = vadd.f32 %v3495_v59, %v3455_v56 }
 0x489   : > { %v3497_v0 = vpop.f32.mrf.mxu1 }
 0x48a   : > { %v3504_v1 = vmax.f32 %v3496_v61, 0.0  ;;  %v3498_v2 = vadd.f32 %v3497_v0, %v3457_v60 }
 0x48b   : > { %v3499_v16 = vpop.f32.mrf.mxu1 }
 0x48c   : > { %v3547_v4 = vmul.f32 %v3540_v62, %v3504_v1  ;;  %v3505_v14 = vmax.f32 %v3498_v2, 0.0 }
 0x48d   : > { %v3500_v5 = vpop.f32.mrf.mxu1 }
 0x48e   : > { %v3548_v19 = vmul.f32 %v3544_v3, %v3505_v14  ;;  %v3550_v6 = vadd.f32 %v3549_v53, %v3547_v4 }
 0x490   : > { %v3551_v63 = vadd.f32 %v3550_v6, %v3548_v19 }
 0x492   : > { %3552 = vadd.xlane.f32.xlu0 %v3551_v63 }
 0x51b   : > { %v3553_v8 = vpop.xlane.xlu0 %3552 }
 0x51c   : > { %v3561_v15 = vadd.f32 %v4395_v7, %v3553_v8 }
 0x51e   : > { %3563 = vst.msk [vmem:[%s452_s22] sm:$0xff] %vm3562_vm1, %v3561_v15 }
 0x51f PF: > { %p21_p11 = scmp.ge.s32.totalorder %s5317_s28, 5   ;;  %s6064_s24 = smov %s5236_s25 }
 0x520   : > { %s6065_s25 = smov %s5240_s26  ;;  %s6066_s26 = smov %s5327_s8 }
 0x521   : > { %s6067_s27 = smov %s5317_s28  ;;  %23 = sbr.rel (!%p21_p11) target bundleno = 9 (0x9), region = 138 }
 0x526   :  { %3583 = vsyncpa [#allocation3], 1 }
 0x527   :  { %3585 = vsyncpa [#allocation3 + $0x1], 1 }
 0x528   :  { %3586 = vsyncpa [#allocation5], 1 }
 0x529   :  { %3588 = vsyncpa [#allocation5 + $0x1], 1 }
 0x52a   :  { %3589 = vsyncpa [#allocation8], 1 }
 0x52b   :  { %3591 = vsyncpa [#allocation8 + $0x1], 1 }

</bundles_post_ra>
